<compile_context>
chip_gen: v6e
topology: v6e:2x2x1
jax: 0.10.0
libtpu: 0.0.40
codegen_flags: <defaults>
</compile_context>

<pallas_src>
import jax
import jax.numpy as jnp
from jax import lax
from jax.experimental import pallas as pl
from jax.experimental.pallas import tpu as pltpu

EPS = 1e-5


def _sigmoid(v):
    return 1.0 / (1.0 + jnp.exp(-v))


# --------------------------- kernel 1: channel attention ---------------------
def channel_att_kernel(x_ref, w1t_ref, b1_ref, w2_ref, b2_ref, ca_ref):
    """Channel-attention scales: ca = sigmoid(MLP(avgpool) + MLP(maxpool)).

    x:   (N, C, H, W) VMEM
    w1t: (Cr, C) VMEM (first Linear, transposed: one row per hidden unit)
    b1:  (Cr,)   SMEM
    w2:  (Cr, C) VMEM (second Linear: one row per hidden unit)
    b2:  (1, C)  VMEM
    ca:  (N, C)  VMEM out
    """
    N, C, H, W = x_ref.shape
    Cr = w1t_ref.shape[0]

    x = x_ref[...]
    inv_hw = 1.0 / float(H * W)
    # Global spatial pooling, one minor axis at a time -> (N, C).
    avg = jnp.sum(jnp.sum(x, axis=3), axis=2) * inv_hw
    mx = jnp.max(jnp.max(x, axis=3), axis=2)

    def mlp(v):  # (N, C) -> (N, C); VPU-only, the MLP is far too small for MXU
        out = jnp.zeros((N, C), jnp.float32) + b2_ref[...]
        for j in range(Cr):
            hj = jnp.sum(v * w1t_ref[j:j + 1, :], axis=1, keepdims=True)
            hj = jnp.maximum(hj + b1_ref[j], 0.0)           # (N, 1) ReLU
            out = out + hj * w2_ref[j:j + 1, :]             # (N,1)*(1,C)
        return out

    ca_ref[...] = _sigmoid(mlp(avg) + mlp(mx))


# ----------------- kernel 2: channel scaling + spatial attention -------------
def spatial_att_kernel(x_ref, ca_ref, wsp_ref, g_ref, bb_ref, o_ref,
                       apad_ref, mpad_ref):
    """x:  (N, C, H, W) VMEM
    ca:   (N, C, 1, W) VMEM (per-(n,c) scale, pre-broadcast along W in XLA)
    wsp:  (K*K*2,) SMEM, tap index = (ky*K+kx)*2 + {0: avg-chan, 1: max-chan}
    g,bb: (1,) SMEM  BatchNorm2d(1) gamma / beta
    o:    (N, C, H, W) VMEM out
    apad/mpad: (N, H+2P, W+2P) VMEM scratch (zero-padded stat maps)
    """
    N, C, H, W = x_ref.shape
    P = (apad_ref.shape[1] - H) // 2
    K = 2 * P + 1

    # ---- channel scaling staged directly into o_ref, fused with the channel
    # avg/max stats: one pass over x, cross-vreg VPU adds/max with 4
    # independent partial accumulators (no XLU lane reductions, no 4-D
    # broadcast/reduction ops, bounded live ranges).
    nacc = min(4, C)
    s_parts, m_parts = [], []
    for c in range(C):
        xc = x_ref[:, c] * ca_ref[:, c]        # (N,H,W) * (N,1,W) sublane splat
        o_ref[:, c] = xc
        if c < nacc:
            s_parts.append(xc)
            m_parts.append(xc)
        else:
            i = c % nacc
            s_parts[i] = s_parts[i] + xc
            m_parts[i] = jnp.maximum(m_parts[i], xc)
    avg_map = s_parts[0]
    max_map = m_parts[0]
    for i in range(1, nacc):
        avg_map = avg_map + s_parts[i]
        max_map = jnp.maximum(max_map, m_parts[i])
    avg_map = avg_map * (1.0 / float(C))       # (N, H, W)

    # ---- padded stat maps: zero only the halo border, then write the interior.
    zrow = jnp.zeros((N, P, W + 2 * P), jnp.float32)
    zcol = jnp.zeros((N, H, P), jnp.float32)
    for pad_ref, m in ((apad_ref, avg_map), (mpad_ref, max_map)):
        pad_ref[:, 0:P, :] = zrow
        pad_ref[:, P + H:2 * P + H, :] = zrow
        pad_ref[:, P:P + H, 0:P] = zcol
        pad_ref[:, P:P + H, P + W:2 * P + W] = zcol
        pad_ref[:, P:P + H, P:P + W] = m

    # ---- Conv2d(2, 1, k=K, pad=P, bias=False): K*K*2 scalar-weighted taps on
    # the VPU (SMEM scalar weights), 4 independent accumulators for ILP.
    # TODO(synk): hoist the per-ky row loads and realize the kx shifts with
    #             pltpu.roll (XLU) instead of per-tap VMEM window reads once
    #             rank-3 in-register lane rotation is validated on the target
    #             toolchain; window reads are kept here for lowering robustness.
    accs = [jnp.zeros((N, H, W), jnp.float32) for _ in range(4)]
    t = 0
    for ky in range(K):
        for kx in range(K):
            idx = (ky * K + kx) * 2
            wa = apad_ref[:, ky:ky + H, kx:kx + W]
            wm = mpad_ref[:, ky:ky + H, kx:kx + W]
            accs[t % 4] = accs[t % 4] + wa * wsp_ref[idx]
            t += 1
            accs[t % 4] = accs[t % 4] + wm * wsp_ref[idx + 1]
            t += 1
    conv = (accs[0] + accs[1]) + (accs[2] + accs[3])        # (N, H, W)

    # ---- BatchNorm2d(1), training-mode batch stats: two-pass mean/variance
    # over N*H*W (biased var, eps=1e-5), no reshape of conv.
    inv_cnt = 1.0 / float(N * H * W)
    mu = jnp.sum(conv) * inv_cnt
    d = conv - mu
    var = jnp.sum(d * d) * inv_cnt
    sa = _sigmoid(d * lax.rsqrt(var + EPS) * g_ref[0] + bb_ref[0])  # (N, H, W)

    # ---- apply spatial attention per channel (free replication across C).
    for c in range(C):
        o_ref[:, c] = o_ref[:, c] * sa


# ----------------------------------- wrapper ---------------------------------
def _vmem_limit_bytes(nbytes):
    # Scoped-VMEM request sized from the actual buffers (+headroom), clamped so
    # it stays inside every generation's physical VMEM (v7x: 64 MiB).
    return int(min(max(2 * nbytes + (1 << 20), 16 * 1024 * 1024),
                   64 * 1024 * 1024))


def cbam_forward(x_nchw, params):
    """x_nchw: (N, C, H, W) float32 -> (N, C, H, W). NCHW-native, no transposes."""
    w1, b1, w2, b2, wsp, bn_g, bn_b = params
    N, C, H, W = x_nchw.shape
    K = wsp.shape[0]
    P = K // 2
    Cr = w1.shape[1]

    x = x_nchw.astype(jnp.float32)
    vmem = pl.BlockSpec(memory_space=pltpu.MemorySpace.VMEM)
    smem = pl.BlockSpec(memory_space=pltpu.MemorySpace.SMEM)
    xbytes = 4 * N * C * H * W

    # ---- kernel 1: channel-attention scales (N, C) ----
    ca = pl.pallas_call(
        channel_att_kernel,
        out_shape=jax.ShapeDtypeStruct((N, C), jnp.float32),
        in_specs=[vmem, vmem, smem, vmem, vmem],
        out_specs=vmem,
        compiler_params=pltpu.CompilerParams(
            vmem_limit_bytes=_vmem_limit_bytes(xbytes)),
        cost_estimate=pl.CostEstimate(
            flops=int(2 * N * C * H * W + 8 * N * C * Cr),
            transcendentals=int(N * C),
            bytes_accessed=int(xbytes + 4 * (N * C + 2 * Cr * C + Cr + C))),
    )(x,
      jnp.transpose(w1).astype(jnp.float32),      # (Cr, C)
      b1.reshape(-1).astype(jnp.float32),          # (Cr,)  SMEM
      w2.astype(jnp.float32),                      # (Cr, C)
      b2.reshape(1, -1).astype(jnp.float32))       # (1, C)

    # Free XLA-side reshape/broadcast: per-(n, c) scales arrive in kernel 2 as
    # per-channel rows so the in-kernel multiply is a plain sublane splat (no
    # cross-lane relayout of the scales inside the kernel).
    ca4 = jnp.broadcast_to(ca[:, :, None, None], (N, C, 1, W))

    # ---- kernel 2: channel scaling + spatial attention ----
    k2_bytes = (2 * xbytes + 4 * (N * C * W + K * K * 2 + 2)
                + 2 * 4 * N * (H + 2 * P) * (W + 2 * P))
    out = pl.pallas_call(
        spatial_att_kernel,
        out_shape=jax.ShapeDtypeStruct((N, C, H, W), jnp.float32),
        in_specs=[vmem, vmem, smem, smem, smem],
        out_specs=vmem,
        scratch_shapes=[
            pltpu.VMEM((N, H + 2 * P, W + 2 * P), jnp.float32),  # padded avg
            pltpu.VMEM((N, H + 2 * P, W + 2 * P), jnp.float32),  # padded max
        ],
        compiler_params=pltpu.CompilerParams(
            vmem_limit_bytes=_vmem_limit_bytes(k2_bytes)),
        cost_estimate=pl.CostEstimate(
            flops=int(2 * 2 * K * K * N * H * W + 8 * N * C * H * W),
            transcendentals=int(N * H * W),
            bytes_accessed=int(k2_bytes)),
    )(x, ca4,
      wsp.reshape(-1).astype(jnp.float32),         # (K*K*2,) SMEM
      bn_g.reshape(1).astype(jnp.float32),          # (1,) SMEM
      bn_b.reshape(1).astype(jnp.float32))          # (1,) SMEM
    # TODO(synk): for production sizes (H, W >= 128, large N) both calls should
    #             become a pipelined grid over (N, H-row tiles) with halo'd
    #             stat-map tiles, cross-tile BN s1/s2 accumulation and
    #             dimension_semantics=("parallel", ...) (v7x: 64 MiB VMEM,
    #             2 TensorCores); bf16 stat maps are a further v6e/v7x-only win.
    return out


# ---------------------------- pure-JAX reference ----------------------------
def ref_forward(x_nchw, params):
    w1, b1, w2, b2, wsp, bn_g, bn_b = params
    K = wsp.shape[0]
    P = K // 2

    # channel attention
    avg = jnp.mean(x_nchw, axis=(2, 3))
    mx = jnp.max(x_nchw, axis=(2, 3))
    mlp = lambda v: jnp.maximum(v @ w1 + b1, 0.0) @ w2 + b2
    ca = _sigmoid(mlp(avg) + mlp(mx))                        # (N, C)
    x_ca = x_nchw * ca[:, :, None, None]

    # spatial attention
    avg_map = jnp.mean(x_ca, axis=1, keepdims=True)
    max_map = jnp.max(x_ca, axis=1, keepdims=True)
    cat = jnp.concatenate([avg_map, max_map], axis=1)        # (N, 2, H, W)
    w_oihw = jnp.transpose(wsp, (2, 0, 1))[None]             # (1, 2, K, K)
    conv = lax.conv_general_dilated(cat, w_oihw, (1, 1), ((P, P), (P, P)),
                                    dimension_numbers=("NCHW", "OIHW", "NCHW"))
    mu = jnp.mean(conv)
    var = jnp.mean((conv - mu) ** 2)
    bn = (conv - mu) * lax.rsqrt(var + EPS) * bn_g[0] + bn_b[0]
    return x_ca * _sigmoid(bn)


# ----------------------------------- main -----------------------------------
if __name__ == "__main__":
    # CBAM(input_channels=32, reduction_ratio=16, kernel_size=7)
    N, C, H, W = 2, 32, 16, 16
    R = 16
    Cr = C // R          # 2
    K = 7

    key = jax.random.PRNGKey(0)
    ks = jax.random.split(key, 8)
    w1 = jax.random.normal(ks[0], (C, Cr), jnp.float32) * 0.2    # Linear(C, C//r)
    b1 = jax.random.normal(ks[1], (Cr,), jnp.float32) * 0.1
    w2 = jax.random.normal(ks[2], (Cr, C), jnp.float32) * 0.2    # Linear(C//r, C)
    b2 = jax.random.normal(ks[3], (C,), jnp.float32) * 0.1
    wsp = jax.random.normal(ks[4], (K, K, 2), jnp.float32) * 0.1  # [...,0]=avg, [...,1]=max
    bn_g = 1.0 + 0.1 * jax.random.normal(ks[5], (1,), jnp.float32)
    bn_b = 0.1 * jax.random.normal(ks[6], (1,), jnp.float32)
    params = (w1, b1, w2, b2, wsp, bn_g, bn_b)

    x = jax.random.normal(ks[7], (N, C, H, W), jnp.float32)

    out = jax.block_until_ready(cbam_forward(x, params))
    ref = jax.block_until_ready(ref_forward(x, params))

    assert out.shape == (N, C, H, W), out.shape
    assert jnp.allclose(out, ref, rtol=1e-3, atol=1e-3), \
        float(jnp.max(jnp.abs(out - ref)))

    print("KERNEL_OK")
</pallas_src>

<mosaic_0001>
module attributes {stable_mosaic.version = 11 : i64} {
  func.func @channel_att_kernel(%arg0: memref<2x32x16x16xf32, #tpu.memory_space<vmem>>, %arg1: memref<2x32xf32, #tpu.memory_space<vmem>>, %arg2: memref<2xf32, #tpu.memory_space<smem>>, %arg3: memref<2x32xf32, #tpu.memory_space<vmem>>, %arg4: memref<1x32xf32, #tpu.memory_space<vmem>>, %arg5: memref<2x32xf32, #tpu.memory_space<vmem>>) attributes {dimension_semantics = [], scalar_prefetch = 0 : i64, scratch_operands = 0 : i64, tpu.core_type = #tpu.core_type<tc>} {
    %c0 = arith.constant 0 : index
    %c0_0 = arith.constant 0 : index
    %c0_1 = arith.constant 0 : index
    %c0_2 = arith.constant 0 : index
    %0 = vector.load %arg0[%c0, %c0_0, %c0_1, %c0_2] : memref<2x32x16x16xf32, #tpu.memory_space<vmem>>, vector<2x32x16x16xf32>
    %cst = arith.constant dense<0.000000e+00> : vector<2x32x16xf32>
    %1 = vector.multi_reduction <add>, %0, %cst [3] : vector<2x32x16x16xf32> to vector<2x32x16xf32>
    %cst_3 = arith.constant dense<0.000000e+00> : vector<2x32xf32>
    %2 = vector.multi_reduction <add>, %1, %cst_3 [2] : vector<2x32x16xf32> to vector<2x32xf32>
    %cst_4 = arith.constant 3.906250e-03 : f32
    %3 = vector.broadcast %cst_4 : f32 to vector<2x32xf32>
    %4 = arith.mulf %2, %3 : vector<2x32xf32>
    %cst_5 = arith.constant dense<0xFF800000> : vector<2x32x16xf32>
    %5 = vector.multi_reduction <maximumf>, %0, %cst_5 [3] : vector<2x32x16x16xf32> to vector<2x32x16xf32>
    %cst_6 = arith.constant dense<0xFF800000> : vector<2x32xf32>
    %6 = vector.multi_reduction <maximumf>, %5, %cst_6 [2] : vector<2x32x16xf32> to vector<2x32xf32>
    %cst_7 = arith.constant 0.000000e+00 : f32
    %7 = vector.broadcast %cst_7 : f32 to vector<2x32xf32>
    %c0_8 = arith.constant 0 : index
    %c0_9 = arith.constant 0 : index
    %8 = vector.load %arg4[%c0_8, %c0_9] : memref<1x32xf32, #tpu.memory_space<vmem>>, vector<1x32xf32>
    %9 = vector.broadcast %8 : vector<1x32xf32> to vector<2x32xf32>
    %10 = arith.addf %7, %9 : vector<2x32xf32>
    %c0_10 = arith.constant 0 : index
    %c0_11 = arith.constant 0 : index
    %11 = vector.load %arg1[%c0_10, %c0_11] : memref<2x32xf32, #tpu.memory_space<vmem>>, vector<1x32xf32>
    %12 = vector.broadcast %11 : vector<1x32xf32> to vector<2x32xf32>
    %13 = arith.mulf %4, %12 : vector<2x32xf32>
    %cst_12 = arith.constant dense<0.000000e+00> : vector<2xf32>
    %14 = vector.multi_reduction <add>, %13, %cst_12 [1] : vector<2x32xf32> to vector<2xf32>
    %15 = vector.shape_cast %14 : vector<2xf32> to vector<2x1xf32>
    %c0_13 = arith.constant 0 : index
    %16 = memref.load %arg2[%c0_13] : memref<2xf32, #tpu.memory_space<smem>>
    %17 = vector.broadcast %16 : f32 to vector<2x1xf32>
    %18 = arith.addf %15, %17 : vector<2x1xf32>
    %cst_14 = arith.constant 0.000000e+00 : f32
    %19 = vector.broadcast %cst_14 : f32 to vector<2x1xf32>
    %20 = arith.maximumf %18, %19 : vector<2x1xf32>
    %c0_15 = arith.constant 0 : index
    %c0_16 = arith.constant 0 : index
    %21 = vector.load %arg3[%c0_15, %c0_16] : memref<2x32xf32, #tpu.memory_space<vmem>>, vector<1x32xf32>
    %22 = vector.broadcast %20 : vector<2x1xf32> to vector<2x32xf32>
    %23 = vector.broadcast %21 : vector<1x32xf32> to vector<2x32xf32>
    %24 = arith.mulf %22, %23 : vector<2x32xf32>
    %25 = arith.addf %10, %24 : vector<2x32xf32>
    %c1 = arith.constant 1 : index
    %c0_17 = arith.constant 0 : index
    %26 = vector.load %arg1[%c1, %c0_17] : memref<2x32xf32, #tpu.memory_space<vmem>>, vector<1x32xf32>
    %27 = vector.broadcast %26 : vector<1x32xf32> to vector<2x32xf32>
    %28 = arith.mulf %4, %27 : vector<2x32xf32>
    %cst_18 = arith.constant dense<0.000000e+00> : vector<2xf32>
    %29 = vector.multi_reduction <add>, %28, %cst_18 [1] : vector<2x32xf32> to vector<2xf32>
    %30 = vector.shape_cast %29 : vector<2xf32> to vector<2x1xf32>
    %c1_19 = arith.constant 1 : index
    %31 = memref.load %arg2[%c1_19] : memref<2xf32, #tpu.memory_space<smem>>
    %32 = vector.broadcast %31 : f32 to vector<2x1xf32>
    %33 = arith.addf %30, %32 : vector<2x1xf32>
    %cst_20 = arith.constant 0.000000e+00 : f32
    %34 = vector.broadcast %cst_20 : f32 to vector<2x1xf32>
    %35 = arith.maximumf %33, %34 : vector<2x1xf32>
    %c1_21 = arith.constant 1 : index
    %c0_22 = arith.constant 0 : index
    %36 = vector.load %arg3[%c1_21, %c0_22] : memref<2x32xf32, #tpu.memory_space<vmem>>, vector<1x32xf32>
    %37 = vector.broadcast %35 : vector<2x1xf32> to vector<2x32xf32>
    %38 = vector.broadcast %36 : vector<1x32xf32> to vector<2x32xf32>
    %39 = arith.mulf %37, %38 : vector<2x32xf32>
    %40 = arith.addf %25, %39 : vector<2x32xf32>
    %cst_23 = arith.constant 0.000000e+00 : f32
    %41 = vector.broadcast %cst_23 : f32 to vector<2x32xf32>
    %c0_24 = arith.constant 0 : index
    %c0_25 = arith.constant 0 : index
    %42 = vector.load %arg4[%c0_24, %c0_25] : memref<1x32xf32, #tpu.memory_space<vmem>>, vector<1x32xf32>
    %43 = vector.broadcast %42 : vector<1x32xf32> to vector<2x32xf32>
    %44 = arith.addf %41, %43 : vector<2x32xf32>
    %c0_26 = arith.constant 0 : index
    %c0_27 = arith.constant 0 : index
    %45 = vector.load %arg1[%c0_26, %c0_27] : memref<2x32xf32, #tpu.memory_space<vmem>>, vector<1x32xf32>
    %46 = vector.broadcast %45 : vector<1x32xf32> to vector<2x32xf32>
    %47 = arith.mulf %6, %46 : vector<2x32xf32>
    %cst_28 = arith.constant dense<0.000000e+00> : vector<2xf32>
    %48 = vector.multi_reduction <add>, %47, %cst_28 [1] : vector<2x32xf32> to vector<2xf32>
    %49 = vector.shape_cast %48 : vector<2xf32> to vector<2x1xf32>
    %c0_29 = arith.constant 0 : index
    %50 = memref.load %arg2[%c0_29] : memref<2xf32, #tpu.memory_space<smem>>
    %51 = vector.broadcast %50 : f32 to vector<2x1xf32>
    %52 = arith.addf %49, %51 : vector<2x1xf32>
    %cst_30 = arith.constant 0.000000e+00 : f32
    %53 = vector.broadcast %cst_30 : f32 to vector<2x1xf32>
    %54 = arith.maximumf %52, %53 : vector<2x1xf32>
    %c0_31 = arith.constant 0 : index
    %c0_32 = arith.constant 0 : index
    %55 = vector.load %arg3[%c0_31, %c0_32] : memref<2x32xf32, #tpu.memory_space<vmem>>, vector<1x32xf32>
    %56 = vector.broadcast %54 : vector<2x1xf32> to vector<2x32xf32>
    %57 = vector.broadcast %55 : vector<1x32xf32> to vector<2x32xf32>
    %58 = arith.mulf %56, %57 : vector<2x32xf32>
    %59 = arith.addf %44, %58 : vector<2x32xf32>
    %c1_33 = arith.constant 1 : index
    %c0_34 = arith.constant 0 : index
    %60 = vector.load %arg1[%c1_33, %c0_34] : memref<2x32xf32, #tpu.memory_space<vmem>>, vector<1x32xf32>
    %61 = vector.broadcast %60 : vector<1x32xf32> to vector<2x32xf32>
    %62 = arith.mulf %6, %61 : vector<2x32xf32>
    %cst_35 = arith.constant dense<0.000000e+00> : vector<2xf32>
    %63 = vector.multi_reduction <add>, %62, %cst_35 [1] : vector<2x32xf32> to vector<2xf32>
    %64 = vector.shape_cast %63 : vector<2xf32> to vector<2x1xf32>
    %c1_36 = arith.constant 1 : index
    %65 = memref.load %arg2[%c1_36] : memref<2xf32, #tpu.memory_space<smem>>
    %66 = vector.broadcast %65 : f32 to vector<2x1xf32>
    %67 = arith.addf %64, %66 : vector<2x1xf32>
    %cst_37 = arith.constant 0.000000e+00 : f32
    %68 = vector.broadcast %cst_37 : f32 to vector<2x1xf32>
    %69 = arith.maximumf %67, %68 : vector<2x1xf32>
    %c1_38 = arith.constant 1 : index
    %c0_39 = arith.constant 0 : index
    %70 = vector.load %arg3[%c1_38, %c0_39] : memref<2x32xf32, #tpu.memory_space<vmem>>, vector<1x32xf32>
    %71 = vector.broadcast %69 : vector<2x1xf32> to vector<2x32xf32>
    %72 = vector.broadcast %70 : vector<1x32xf32> to vector<2x32xf32>
    %73 = arith.mulf %71, %72 : vector<2x32xf32>
    %74 = arith.addf %59, %73 : vector<2x32xf32>
    %75 = arith.addf %40, %74 : vector<2x32xf32>
    %cst_40 = arith.constant 0.000000e+00 : f32
    %76 = vector.broadcast %cst_40 : f32 to vector<2x32xf32>
    %77 = arith.subf %76, %75 : vector<2x32xf32>
    %78 = math.exp %77 : vector<2x32xf32>
    %cst_41 = arith.constant 1.000000e+00 : f32
    %79 = vector.broadcast %cst_41 : f32 to vector<2x32xf32>
    %80 = arith.addf %79, %78 : vector<2x32xf32>
    %cst_42 = arith.constant 1.000000e+00 : f32
    %81 = vector.broadcast %cst_42 : f32 to vector<2x32xf32>
    %82 = arith.divf %81, %80 : vector<2x32xf32>
    %c0_43 = arith.constant 0 : index
    %c0_44 = arith.constant 0 : index
    %83 = vector.load %arg5[%c0_43, %c0_44] : memref<2x32xf32, #tpu.memory_space<vmem>>, vector<2x32xf32>
    tpu.vector_store %arg5[%c0_43, %c0_44], %82 {strides = array<i32>} : memref<2x32xf32, #tpu.memory_space<vmem>>, vector<2x32xf32>,
    return
  }
}

</mosaic_0001>

<bundles_post_ra>
// kernel: tpu_custom_call.1
= control target key start
LH: loop header
LB: loop body
LE: loop exit
PB: predicated region body
PF: predicated region fallthrough
CT: control target
= control target key end

     0   :  { %10 = vsyncpa [#allocation4], 0  ;;  %s5194_s0 = inlined_call_operand.vmem [shape: f32[2,32,16,16], index: 0, kind: input, shape index: {}]   ;;  %s5195_s1 = inlined_call_operand.vmem [shape: f32[2,32], index: 1, kind: input, shape index: {}]   ;;  %s5196_s2 = inlined_call_operand.vmem [shape: f32[2], index: 2, kind: input, shape index: {}]   ;;  %s5197_s3 = inlined_call_operand.vmem [shape: f32[2,32], index: 3, kind: input, shape index: {}]   ;;  %s5198_s4 = inlined_call_operand.vmem [shape: f32[1,32], index: 4, kind: input, shape index: {}]   ;;  %s5199_s5 = inlined_call_operand.hbm [shape: f32[2,32], index: 5, kind: output, shape index: {}]  }
   0x1   :  { %11 = vsyncpa [#allocation3], 0  ;;  %s22_s20 = sshll.u32 %s5196_s2, 4  ;;  %s23_s20 = int_to_ptr.vmem [resolvable:$true] %s22_s20 }
   0x2   :  { %s3125_s21 = scalar_lea.vmem %s23_s20, 16  ;;  %p3130_p1 = scmp.lt.s32.totalorder %s23_s20, %s23_s20 }
   0x3   :  { %p3126_p0 = scmp.ne.s32.totalorder %s23_s20, %s3125_s21  ;;  %p3131_p2 = scmp.lt.s32.totalorder %s3125_s21, %s3125_s21 }
   0x5   :  { %p3132_p3 = por %p3131_p2, %p3130_p1 }
   0x7   :  { %p3133_p4 = pnand %p3132_p3, %p3126_p0 }
   0x9   :  { %3136 = shalt.err (!%p3133_p4)
}
   0xa   :  { %s3161_s22 = smov [#allocation2]  }
   0xb   :  { %25 = dma.vmem_to_smem %s23_s20, 16, %s3161_s22, [#allocation4]  }
   0xc   :  { %3157 = dma.done.wait [#allocation4], 16  }
   0xd   :  { %3158 = vsyncadd [#allocation4], 4294967280 }
   0xe   :  { %33 = sfence }
   0xf   :  { %v36_v0 = vld [vmem:[%s5194_s0 + $0x10] sm:$0xff]  ;;  %vm162_vm0 = vcmask 130048   ;;  %v34_v1 = vld [vmem:[%s5194_s0] sm:$0xff]  ;;  %v37_v2 = vld [vmem:[%s5194_s0 + $0x18] sm:$0xff]  ;;  %vm686_vm1 = vcmask 130112   ;;  %vm1255_vm2 = vcmask 1041409  }
  0x10   :  { %v169_v3 = vsel %vm162_vm0, %v36_v0, 0.0  ;;  %v163_v4 = vsel %vm162_vm0, %v34_v1, 0.0  ;;  %v35_v5 = vld [vmem:[%s5194_s0 + $0x8] sm:$0xff]  ;;  %v172_v6 = vsel %vm162_vm0, %v37_v2, 0.0  ;;  %v38_v9 = vld [vmem:[%s5194_s0 + $0x20] sm:$0xff]  ;;  %v41_v12 = vld [vmem:[%s5194_s0 + $0x38] sm:$0xff] }
  0x11   :  { %170 = vadd.xlane.f32.xlu1 %v169_v3  ;;  %164 = vadd.xlane.f32.xlu0 %v163_v4  ;;  %v166_v7 = vsel %vm162_vm0, %v35_v5, 0.0  ;;  %v39_v8 = vld [vmem:[%s5194_s0 + $0x28] sm:$0xff]  ;;  %v175_v11 = vsel %vm162_vm0, %v38_v9, 0.0  ;;  %v40_v13 = vld [vmem:[%s5194_s0 + $0x30] sm:$0xff]  ;;  %v184_v14 = vsel %vm162_vm0, %v41_v12, 0.0  ;;  %v42_v17 = vld [vmem:[%s5194_s0 + $0x40] sm:$0xff] }
  0x12   :  { %v178_v10 = vsel %vm162_vm0, %v39_v8, 0.0  ;;  %v181_v15 = vsel %vm162_vm0, %v40_v13, 0.0  ;;  %v43_v16 = vld [vmem:[%s5194_s0 + $0x48] sm:$0xff]  ;;  %v187_v19 = vsel %vm162_vm0, %v42_v17, 0.0  ;;  %v45_v20 = vld [vmem:[%s5194_s0 + $0x58] sm:$0xff]  ;;  %v44_v21 = vld [vmem:[%s5194_s0 + $0x50] sm:$0xff] }
  0x13   :  { %v190_v18 = vsel %vm162_vm0, %v43_v16, 0.0  ;;  %v196_v22 = vsel %vm162_vm0, %v45_v20, 0.0  ;;  %v193_v23 = vsel %vm162_vm0, %v44_v21, 0.0  ;;  %v47_v24 = vld [vmem:[%s5194_s0 + $0x68] sm:$0xff]  ;;  %v46_v25 = vld [vmem:[%s5194_s0 + $0x60] sm:$0xff]  ;;  %v49_v28 = vld [vmem:[%s5194_s0 + $0x78] sm:$0xff] }
  0x14   :  { %v202_v26 = vsel %vm162_vm0, %v47_v24, 0.0  ;;  %v199_v27 = vsel %vm162_vm0, %v46_v25, 0.0  ;;  %v48_v29 = vld [vmem:[%s5194_s0 + $0x70] sm:$0xff]  ;;  %v208_v30 = vsel %vm162_vm0, %v49_v28, 0.0  ;;  %v51_v32 = vld [vmem:[%s5194_s0 + $0x88] sm:$0xff]  ;;  %v50_v33 = vld [vmem:[%s5194_s0 + $0x80] sm:$0xff] }
  0x15   :  { %173 = vadd.xlane.f32.xlu1 %v172_v6  ;;  %167 = vadd.xlane.f32.xlu0 %v166_v7  ;;  %v205_v31 = vsel %vm162_vm0, %v48_v29, 0.0  ;;  %v214_v34 = vsel %vm162_vm0, %v51_v32, 0.0  ;;  %v211_v35 = vsel %vm162_vm0, %v50_v33, 0.0  ;;  %v53_v36 = vld [vmem:[%s5194_s0 + $0x98] sm:$0xff]  ;;  %v52_v37 = vld [vmem:[%s5194_s0 + $0x90] sm:$0xff]  ;;  %v55_v40 = vld [vmem:[%s5194_s0 + $0xa8] sm:$0xff] }
  0x16   :  { %v220_v38 = vsel %vm162_vm0, %v53_v36, 0.0  ;;  %v217_v39 = vsel %vm162_vm0, %v52_v37, 0.0  ;;  %v54_v41 = vld [vmem:[%s5194_s0 + $0xa0] sm:$0xff]  ;;  %v226_v42 = vsel %vm162_vm0, %v55_v40, 0.0  ;;  %v57_v44 = vld [vmem:[%s5194_s0 + $0xb8] sm:$0xff]  ;;  %v56_v45 = vld [vmem:[%s5194_s0 + $0xb0] sm:$0xff] }
  0x17   :  { %v223_v43 = vsel %vm162_vm0, %v54_v41, 0.0  ;;  %v232_v46 = vsel %vm162_vm0, %v57_v44, 0.0  ;;  %v229_v47 = vsel %vm162_vm0, %v56_v45, 0.0  ;;  %v59_v48 = vld [vmem:[%s5194_s0 + $0xc8] sm:$0xff]  ;;  %v58_v49 = vld [vmem:[%s5194_s0 + $0xc0] sm:$0xff]  ;;  %v61_v52 = vld [vmem:[%s5194_s0 + $0xd8] sm:$0xff] }
  0x18   :  { %v238_v50 = vsel %vm162_vm0, %v59_v48, 0.0  ;;  %v235_v51 = vsel %vm162_vm0, %v58_v49, 0.0  ;;  %v60_v53 = vld [vmem:[%s5194_s0 + $0xd0] sm:$0xff]  ;;  %v244_v54 = vsel %vm162_vm0, %v61_v52, 0.0  ;;  %v63_v56 = vld [vmem:[%s5194_s0 + $0xe8] sm:$0xff]  ;;  %v62_v57 = vld [vmem:[%s5194_s0 + $0xe0] sm:$0xff] }
  0x19   :  { %179 = vadd.xlane.f32.xlu1 %v178_v10  ;;  %176 = vadd.xlane.f32.xlu0 %v175_v11  ;;  %v241_v55 = vsel %vm162_vm0, %v60_v53, 0.0  ;;  %v250_v58 = vsel %vm162_vm0, %v63_v56, 0.0  ;;  %v247_v59 = vsel %vm162_vm0, %v62_v57, 0.0  ;;  %v65_v60 = vld [vmem:[%s5194_s0 + $0xf8] sm:$0xff]  ;;  %v64_v61 = vld [vmem:[%s5194_s0 + $0xf0] sm:$0xff]  ;;  %v67_v0 = vld [vmem:[%s5194_s0 + $0x108] sm:$0xff] }
  0x1a   :  { %v256_v62 = vsel %vm162_vm0, %v65_v60, 0.0  ;;  %v253_v63 = vsel %vm162_vm0, %v64_v61, 0.0  ;;  %v66_v1 = vld [vmem:[%s5194_s0 + $0x100] sm:$0xff]  ;;  %v262_v2 = vsel %vm162_vm0, %v67_v0, 0.0  ;;  %v69_v4 = vld [vmem:[%s5194_s0 + $0x118] sm:$0xff]  ;;  %v68_v5 = vld [vmem:[%s5194_s0 + $0x110] sm:$0xff] }
  0x1b   :  { %v259_v3 = vsel %vm162_vm0, %v66_v1, 0.0  ;;  %v268_v6 = vsel %vm162_vm0, %v69_v4, 0.0  ;;  %v265_v7 = vsel %vm162_vm0, %v68_v5, 0.0  ;;  %v71_v8 = vld [vmem:[%s5194_s0 + $0x128] sm:$0xff]  ;;  %v70_v9 = vld [vmem:[%s5194_s0 + $0x120] sm:$0xff]  ;;  %v73_v12 = vld [vmem:[%s5194_s0 + $0x138] sm:$0xff] }
  0x1c   :  { %v274_v10 = vsel %vm162_vm0, %v71_v8, 0.0  ;;  %v271_v11 = vsel %vm162_vm0, %v70_v9, 0.0  ;;  %v72_v13 = vld [vmem:[%s5194_s0 + $0x130] sm:$0xff]  ;;  %v75_v16 = vld [vmem:[%s5194_s0 + $0x148] sm:$0xff]  ;;  %v74_v17 = vld [vmem:[%s5194_s0 + $0x140] sm:$0xff]  ;;  %vm1257_vm3 = vcmask 1042434  }
  0x1d   :  { %185 = vadd.xlane.f32.xlu1 %v184_v14  ;;  %182 = vadd.xlane.f32.xlu0 %v181_v15  ;;  %v280_v14 = vsel %vm162_vm0, %v73_v12, 0.0  ;;  %v277_v15 = vsel %vm162_vm0, %v72_v13, 0.0  ;;  %v77_v20 = vld [vmem:[%s5194_s0 + $0x158] sm:$0xff]  ;;  %v76_v21 = vld [vmem:[%s5194_s0 + $0x150] sm:$0xff]  ;;  %v79_v24 = vld [vmem:[%s5194_s0 + $0x168] sm:$0xff]  ;;  %vm1259_vm4 = vcmask 1043459  }
  0x1e   :  { %v78_v25 = vld [vmem:[%s5194_s0 + $0x160] sm:$0xff]  ;;  %v81_v28 = vld [vmem:[%s5194_s0 + $0x178] sm:$0xff]  ;;  %v80_v29 = vld [vmem:[%s5194_s0 + $0x170] sm:$0xff]  ;;  %vm1261_vm5 = vcmask 1044484   ;;  %vm1263_vm6 = vcmask 1045509   ;;  %vm1265_vm7 = vcmask 1046534  }
  0x1f   :  { %v83_v32 = vld [vmem:[%s5194_s0 + $0x188] sm:$0xff]  ;;  %v82_v33 = vld [vmem:[%s5194_s0 + $0x180] sm:$0xff]  ;;  %v85_v36 = vld [vmem:[%s5194_s0 + $0x198] sm:$0xff]  ;;  %vm1267_vm8 = vcmask 1047559   ;;  %vm2621_vm9 = vcmask 195712   ;;  %vm2628_vm10 = vcmask 261312  }
  0x20   :  { %v84_v37 = vld [vmem:[%s5194_s0 + $0x190] sm:$0xff]  ;;  %v87_v40 = vld [vmem:[%s5194_s0 + $0x1a8] sm:$0xff]  ;;  %v86_v41 = vld [vmem:[%s5194_s0 + $0x1a0] sm:$0xff]  ;;  %vm2651_vm11 = vcmask 254976   ;;  %s2986_s18 = sld [smem:[#allocation2 + $0x1]] }
  0x21   :  { %191 = vadd.xlane.f32.xlu1 %v190_v18  ;;  %188 = vadd.xlane.f32.xlu0 %v187_v19  ;;  %v286_v18 = vsel %vm162_vm0, %v75_v16, 0.0  ;;  %v283_v19 = vsel %vm162_vm0, %v74_v17, 0.0  ;;  %v89_v44 = vld [vmem:[%s5194_s0 + $0x1b8] sm:$0xff]  ;;  %v88_v45 = vld [vmem:[%s5194_s0 + $0x1b0] sm:$0xff]  ;;  %v91_v48 = vld [vmem:[%s5194_s0 + $0x1c8] sm:$0xff] }
  0x22   :  { %v90_v49 = vld [vmem:[%s5194_s0 + $0x1c0] sm:$0xff]  ;;  %v93_v52 = vld [vmem:[%s5194_s0 + $0x1d8] sm:$0xff]  ;;  %v92_v53 = vld [vmem:[%s5194_s0 + $0x1d0] sm:$0xff] }
  0x23   :  { %v95_v56 = vld [vmem:[%s5194_s0 + $0x1e8] sm:$0xff]  ;;  %v94_v57 = vld [vmem:[%s5194_s0 + $0x1e0] sm:$0xff]  ;;  %v97_v60 = vld [vmem:[%s5194_s0 + $0x1f8] sm:$0xff] }
  0x24   :  { %v96_v61 = vld [vmem:[%s5194_s0 + $0x1f0] sm:$0xff]  ;;  %v99_v0 = vld [vmem:[%s5194_s0 + $0x208] sm:$0xff]  ;;  %v98_v1 = vld [vmem:[%s5194_s0 + $0x200] sm:$0xff] }
  0x25   :  { %197 = vadd.xlane.f32.xlu1 %v196_v22  ;;  %194 = vadd.xlane.f32.xlu0 %v193_v23  ;;  %v292_v22 = vsel %vm162_vm0, %v77_v20, 0.0  ;;  %v289_v23 = vsel %vm162_vm0, %v76_v21, 0.0  ;;  %v101_v4 = vld [vmem:[%s5194_s0 + $0x218] sm:$0xff]  ;;  %v100_v5 = vld [vmem:[%s5194_s0 + $0x210] sm:$0xff]  ;;  %v103_v9 = vld [vmem:[%s5194_s0 + $0x228] sm:$0xff] }
  0x26   :  { %v361_v8 = vsel %vm162_vm0, %v100_v5, 0.0  ;;  %v370_v12 = vsel %vm162_vm0, %v103_v9, 0.0  ;;  %v104_v16 = vld [vmem:[%s5194_s0 + $0x230] sm:$0xff] }
  0x27   :  { %v373_v21 = vsel %vm162_vm0, %v104_v16, 0.0 }
  0x29   :  { %203 = vadd.xlane.f32.xlu1 %v202_v26  ;;  %200 = vadd.xlane.f32.xlu0 %v199_v27  ;;  %v298_v26 = vsel %vm162_vm0, %v79_v24, 0.0  ;;  %v295_v27 = vsel %vm162_vm0, %v78_v25, 0.0  ;;  %v107_v24 = vld [vmem:[%s5194_s0 + $0x248] sm:$0xff]  ;;  %v106_v25 = vld [vmem:[%s5194_s0 + $0x240] sm:$0xff] }
  0x2d   :  { %209 = vadd.xlane.f32.xlu1 %v208_v30  ;;  %206 = vadd.xlane.f32.xlu0 %v205_v31  ;;  %v304_v30 = vsel %vm162_vm0, %v81_v28, 0.0  ;;  %v301_v31 = vsel %vm162_vm0, %v80_v29, 0.0  ;;  %v382_v28 = vsel %vm162_vm0, %v107_v24, 0.0  ;;  %v379_v29 = vsel %vm162_vm0, %v106_v25, 0.0  ;;  %v119_v25 = vld [vmem:[%s5194_s0 + $0x2a8] sm:$0xff] }
  0x31   :  { %215 = vadd.xlane.f32.xlu1 %v214_v34  ;;  %212 = vadd.xlane.f32.xlu0 %v211_v35  ;;  %v310_v34 = vsel %vm162_vm0, %v83_v32, 0.0  ;;  %v307_v35 = vsel %vm162_vm0, %v82_v33, 0.0 }
  0x35   :  { %221 = vadd.xlane.f32.xlu1 %v220_v38  ;;  %218 = vadd.xlane.f32.xlu0 %v217_v39  ;;  %v316_v38 = vsel %vm162_vm0, %v85_v36, 0.0  ;;  %v313_v39 = vsel %vm162_vm0, %v84_v37, 0.0 }
  0x39   :  { %227 = vadd.xlane.f32.xlu1 %v226_v42  ;;  %224 = vadd.xlane.f32.xlu0 %v223_v43  ;;  %v322_v42 = vsel %vm162_vm0, %v87_v40, 0.0  ;;  %v319_v43 = vsel %vm162_vm0, %v86_v41, 0.0 }
  0x3d   :  { %233 = vadd.xlane.f32.xlu1 %v232_v46  ;;  %230 = vadd.xlane.f32.xlu0 %v229_v47  ;;  %v328_v46 = vsel %vm162_vm0, %v89_v44, 0.0  ;;  %v325_v47 = vsel %vm162_vm0, %v88_v45, 0.0  ;;  %v111_v45 = vld [vmem:[%s5194_s0 + $0x268] sm:$0xff] }
  0x41   :  { %239 = vadd.xlane.f32.xlu1 %v238_v50  ;;  %236 = vadd.xlane.f32.xlu0 %v235_v51  ;;  %v334_v50 = vsel %vm162_vm0, %v91_v48, 0.0  ;;  %v331_v51 = vsel %vm162_vm0, %v90_v49, 0.0 }
  0x45   :  { %245 = vadd.xlane.f32.xlu1 %v244_v54  ;;  %242 = vadd.xlane.f32.xlu0 %v241_v55  ;;  %v340_v54 = vsel %vm162_vm0, %v93_v52, 0.0  ;;  %v337_v55 = vsel %vm162_vm0, %v92_v53, 0.0 }
  0x49   :  { %251 = vadd.xlane.f32.xlu1 %v250_v58  ;;  %248 = vadd.xlane.f32.xlu0 %v247_v59  ;;  %v346_v58 = vsel %vm162_vm0, %v95_v56, 0.0  ;;  %v343_v59 = vsel %vm162_vm0, %v94_v57, 0.0  ;;  %v112_v56 = vld [vmem:[%s5194_s0 + $0x270] sm:$0xff] }
  0x4d   :  { %257 = vadd.xlane.f32.xlu1 %v256_v62  ;;  %254 = vadd.xlane.f32.xlu0 %v253_v63  ;;  %v352_v62 = vsel %vm162_vm0, %v97_v60, 0.0  ;;  %v349_v63 = vsel %vm162_vm0, %v96_v61, 0.0 }
  0x51   :  { %263 = vadd.xlane.f32.xlu1 %v262_v2  ;;  %260 = vadd.xlane.f32.xlu0 %v259_v3  ;;  %v358_v2 = vsel %vm162_vm0, %v99_v0, 0.0  ;;  %v355_v3 = vsel %vm162_vm0, %v98_v1, 0.0  ;;  %v115_v1 = vld [vmem:[%s5194_s0 + $0x288] sm:$0xff] }
  0x55   :  { %269 = vadd.xlane.f32.xlu1 %v268_v6  ;;  %266 = vadd.xlane.f32.xlu0 %v265_v7  ;;  %v675_v6 = vlaneseq  ;;  %v364_v7 = vsel %vm162_vm0, %v101_v4, 0.0 }
  0x59   :  { %275 = vadd.xlane.f32.xlu1 %v274_v10  ;;  %272 = vadd.xlane.f32.xlu0 %v271_v11  ;;  %v102_v10 = vld [vmem:[%s5194_s0 + $0x220] sm:$0xff]  ;;  %v3475_v11 = vand.u32 127, %v675_v6 }
  0x5a   :  { %v367_v13 = vsel %vm162_vm0, %v102_v10, 0.0 }
  0x5b   :  { %v681_v17 = vadd.s32 4294967288, %v3475_v11 }
  0x5d   :  { %281 = vadd.xlane.f32.xlu1 %v280_v14  ;;  %278 = vadd.xlane.f32.xlu0 %v277_v15  ;;  %v3479_v14 = vshrl.u32 %v675_v6, 7  ;;  %v105_v15 = vld [vmem:[%s5194_s0 + $0x238] sm:$0xff] }
  0x5e   :  { %v376_v20 = vsel %vm162_vm0, %v105_v15, 0.0 }
  0x61   :  { %287 = vadd.xlane.f32.xlu1 %v286_v18  ;;  %284 = vadd.xlane.f32.xlu0 %v283_v19 }
  0x65   :  { %293 = vadd.xlane.f32.xlu1 %v292_v22  ;;  %290 = vadd.xlane.f32.xlu0 %v289_v23  ;;  %v3492_v22 = vsub.s32 %v3475_v11, %v3479_v14  ;;  %v3495_v23 = vsub.s32 %v681_v17, %v3479_v14 }
  0x69   :  { %299 = vadd.xlane.f32.xlu1 %v298_v26  ;;  %296 = vadd.xlane.f32.xlu0 %v295_v27 }
  0x6d   :  { %305 = vadd.xlane.f32.xlu1 %v304_v30  ;;  %302 = vadd.xlane.f32.xlu0 %v301_v31 }
  0x71   :  { %311 = vadd.xlane.f32.xlu1 %v310_v34  ;;  %308 = vadd.xlane.f32.xlu0 %v307_v35  ;;  %v109_v34 = vld [vmem:[%s5194_s0 + $0x258] sm:$0xff]  ;;  %v108_v35 = vld [vmem:[%s5194_s0 + $0x250] sm:$0xff] }
  0x72   :  { %v388_v41 = vsel %vm162_vm0, %v109_v34, 0.0 }
  0x75   :  { %317 = vadd.xlane.f32.xlu1 %v316_v38  ;;  %314 = vadd.xlane.f32.xlu0 %v313_v39 }
  0x79   :  { %323 = vadd.xlane.f32.xlu1 %v322_v42  ;;  %320 = vadd.xlane.f32.xlu0 %v319_v43  ;;  %v385_v42 = vsel %vm162_vm0, %v108_v35, 0.0  ;;  %v121_v35 = vld [vmem:[%s5194_s0 + $0x2b8] sm:$0xff] }
  0x7d   :  { %329 = vadd.xlane.f32.xlu1 %v328_v46  ;;  %326 = vadd.xlane.f32.xlu0 %v325_v47  ;;  %v110_v46 = vld [vmem:[%s5194_s0 + $0x260] sm:$0xff] }
  0x7e   :  { %v391_v52 = vsel %vm162_vm0, %v110_v46, 0.0  ;;  %v122_v46 = vld [vmem:[%s5194_s0 + $0x2c0] sm:$0xff] }
  0x81   :  { %335 = vadd.xlane.f32.xlu1 %v334_v50  ;;  %332 = vadd.xlane.f32.xlu0 %v331_v51  ;;  %v394_v51 = vsel %vm162_vm0, %v111_v45, 0.0  ;;  %v123_v45 = vld [vmem:[%s5194_s0 + $0x2c8] sm:$0xff] }
  0x85   :  { %341 = vadd.xlane.f32.xlu1 %v340_v54  ;;  %338 = vadd.xlane.f32.xlu0 %v337_v55  ;;  %v113_v55 = vld [vmem:[%s5194_s0 + $0x278] sm:$0xff] }
  0x86   :  { %v400_v61 = vsel %vm162_vm0, %v113_v55, 0.0  ;;  %v124_v55 = vld [vmem:[%s5194_s0 + $0x2d0] sm:$0xff] }
  0x89   :  { %347 = vadd.xlane.f32.xlu1 %v346_v58  ;;  %344 = vadd.xlane.f32.xlu0 %v343_v59 }
  0x8d   :  { %353 = vadd.xlane.f32.xlu1 %v352_v62  ;;  %350 = vadd.xlane.f32.xlu0 %v349_v63  ;;  %v397_v62 = vsel %vm162_vm0, %v112_v56, 0.0 }
  0x91   :  { %359 = vadd.xlane.f32.xlu1 %v358_v2  ;;  %356 = vadd.xlane.f32.xlu0 %v355_v3  ;;  %v114_v2 = vld [vmem:[%s5194_s0 + $0x280] sm:$0xff] }
  0x95   :  { %365 = vadd.xlane.f32.xlu1 %v364_v7  ;;  %362 = vadd.xlane.f32.xlu0 %v361_v8  ;;  %v406_v7 = vsel %vm162_vm0, %v115_v1, 0.0  ;;  %v403_v8 = vsel %vm162_vm0, %v114_v2, 0.0  ;;  %v126_v1 = vld [vmem:[%s5194_s0 + $0x2e0] sm:$0xff] }
  0x99   :  { %371 = vadd.xlane.f32.xlu1 %v370_v12  ;;  %368 = vadd.xlane.f32.xlu0 %v367_v13  ;;  %v117_v12 = vld [vmem:[%s5194_s0 + $0x298] sm:$0xff]  ;;  %v116_v13 = vld [vmem:[%s5194_s0 + $0x290] sm:$0xff] }
  0x9a   :  { %v171_v18 = vpop.xlane.xlu1 %170  ;;  %v165_v19 = vpop.xlane.xlu0 %164 }
  0x9b   :  { %v691_v30 = vrot.slane %v171_v18, %v3492_v22  ;;  %v680_v31 = vrot.slane %v165_v19, %v3492_v22  ;;  %v412_v18 = vsel %vm162_vm0, %v117_v12, 0.0  ;;  %v409_v19 = vsel %vm162_vm0, %v116_v13, 0.0  ;;  %v128_v12 = vld [vmem:[%s5194_s0 + $0x2f0] sm:$0xff] }
  0x9d   :  { %377 = vadd.xlane.f32.xlu1 %v376_v20  ;;  %374 = vadd.xlane.f32.xlu0 %v373_v21 }
  0x9e   :  { %v174_v26 = vpop.xlane.xlu1 %173  ;;  %v168_v27 = vpop.xlane.xlu0 %167 }
  0x9f   :  { %v695_v32 = vrot.slane %v174_v26, %v3495_v23  ;;  %v685_v33 = vrot.slane %v168_v27, %v3495_v23  ;;  %v118_v26 = vld [vmem:[%s5194_s0 + $0x2a0] sm:$0xff] }
  0xa1   :  { %v696_v36 = vsel %vm686_vm1, %v695_v32, %v691_v30  ;;  %v687_v37 = vsel %vm686_vm1, %v685_v33, %v680_v31  ;;  %383 = vadd.xlane.f32.xlu1 %v382_v28  ;;  %380 = vadd.xlane.f32.xlu0 %v379_v29  ;;  %v418_v30 = vsel %vm162_vm0, %v119_v25, 0.0  ;;  %v415_v31 = vsel %vm162_vm0, %v118_v26, 0.0 }
  0xa2   :  { %v1256_v38 = vsel %vm1255_vm2, %v696_v36, %v687_v37  ;;  %v180_v39 = vpop.xlane.xlu1 %179  ;;  %v177_v40 = vpop.xlane.xlu0 %176  ;;  %v120_v36 = vld [vmem:[%s5194_s0 + $0x2b0] sm:$0xff] }
  0xa3   :  { %v704_v43 = vrot.slane %v180_v39, %v3495_v23  ;;  %v700_v44 = vrot.slane %v177_v40, %v3492_v22  ;;  %v424_v40 = vsel %vm162_vm0, %v121_v35, 0.0  ;;  %v134_v35 = vld [vmem:[%s5194_s0 + $0x320] sm:$0xff] }
  0xa5   :  { %v705_v47 = vsel %vm686_vm1, %v704_v43, %v700_v44  ;;  %389 = vadd.xlane.f32.xlu1 %v388_v41  ;;  %386 = vadd.xlane.f32.xlu0 %v385_v42  ;;  %v421_v41 = vsel %vm162_vm0, %v120_v36, 0.0 }
  0xa6   :  { %v1258_v48 = vsel %vm1257_vm3, %v705_v47, %v1256_v38  ;;  %v186_v49 = vpop.xlane.xlu1 %185  ;;  %v183_v50 = vpop.xlane.xlu0 %182 }
  0xa7   :  { %v713_v53 = vrot.slane %v186_v49, %v3495_v23  ;;  %v709_v54 = vrot.slane %v183_v50, %v3492_v22  ;;  %v430_v50 = vsel %vm162_vm0, %v123_v45, 0.0 }
  0xa9   :  { %v714_v57 = vsel %vm686_vm1, %v713_v53, %v709_v54  ;;  %395 = vadd.xlane.f32.xlu1 %v394_v51  ;;  %392 = vadd.xlane.f32.xlu0 %v391_v52  ;;  %v427_v51 = vsel %vm162_vm0, %v122_v46, 0.0  ;;  %v125_v54 = vld [vmem:[%s5194_s0 + $0x2d8] sm:$0xff] }
  0xaa   :  { %v1260_v58 = vsel %vm1259_vm4, %v714_v57, %v1258_v48  ;;  %v192_v59 = vpop.xlane.xlu1 %191  ;;  %v189_v60 = vpop.xlane.xlu0 %188 }
  0xab   :  { %v722_v63 = vrot.slane %v192_v59, %v3495_v23  ;;  %v718_v0 = vrot.slane %v189_v60, %v3492_v22  ;;  %v436_v60 = vsel %vm162_vm0, %v125_v54, 0.0  ;;  %v140_v54 = vld [vmem:[%s5194_s0 + $0x350] sm:$0xff] }
  0xad   :  { %v723_v3 = vsel %vm686_vm1, %v722_v63, %v718_v0  ;;  %401 = vadd.xlane.f32.xlu1 %v400_v61  ;;  %398 = vadd.xlane.f32.xlu0 %v397_v62  ;;  %v433_v61 = vsel %vm162_vm0, %v124_v55, 0.0  ;;  %v127_v0 = vld [vmem:[%s5194_s0 + $0x2e8] sm:$0xff] }
  0xae   :  { %v1262_v4 = vsel %vm1261_vm5, %v723_v3, %v1260_v58  ;;  %v198_v5 = vpop.xlane.xlu1 %197  ;;  %v195_v6 = vpop.xlane.xlu0 %194 }
  0xaf   :  { %v731_v9 = vrot.slane %v198_v5, %v3495_v23  ;;  %v727_v10 = vrot.slane %v195_v6, %v3492_v22  ;;  %v442_v6 = vsel %vm162_vm0, %v127_v0, 0.0 }
  0xb1   :  { %v732_v15 = vsel %vm686_vm1, %v731_v9, %v727_v10  ;;  %407 = vadd.xlane.f32.xlu1 %v406_v7  ;;  %404 = vadd.xlane.f32.xlu0 %v403_v8  ;;  %v439_v7 = vsel %vm162_vm0, %v126_v1, 0.0  ;;  %v129_v10 = vld [vmem:[%s5194_s0 + $0x2f8] sm:$0xff] }
  0xb2   :  { %v204_v16 = vpop.xlane.xlu1 %203  ;;  %v201_v17 = vpop.xlane.xlu0 %200  ;;  %v1264_v20 = vsel %vm1263_vm6, %v732_v15, %v1262_v4  ;;  %v145_v1 = vld [vmem:[%s5194_s0 + $0x378] sm:$0xff] }
  0xb3   :  { %v740_v21 = vrot.slane %v204_v16, %v3495_v23  ;;  %v736_v24 = vrot.slane %v201_v17, %v3492_v22 }
  0xb5   :  { %v741_v27 = vsel %vm686_vm1, %v740_v21, %v736_v24  ;;  %413 = vadd.xlane.f32.xlu1 %v412_v18  ;;  %410 = vadd.xlane.f32.xlu0 %v409_v19  ;;  %v448_v18 = vsel %vm162_vm0, %v129_v10, 0.0  ;;  %v445_v19 = vsel %vm162_vm0, %v128_v12, 0.0  ;;  %v130_v21 = vld [vmem:[%s5194_s0 + $0x300] sm:$0xff] }
  0xb6   :  { %v210_v28 = vpop.xlane.xlu1 %209  ;;  %v207_v29 = vpop.xlane.xlu0 %206  ;;  %v1266_v32 = vsel %vm1265_vm7, %v741_v27, %v1264_v20  ;;  %v131_v20 = vld [vmem:[%s5194_s0 + $0x308] sm:$0xff]  ;;  %v451_v27 = vsel %vm162_vm0, %v130_v21, 0.0 }
  0xb7   :  { %v749_v33 = vrot.slane %v210_v28, %v3495_v23  ;;  %v745_v34 = vrot.slane %v207_v29, %v3492_v22  ;;  %v454_v26 = vsel %vm162_vm0, %v131_v20, 0.0  ;;  %v133_v28 = vld [vmem:[%s5194_s0 + $0x318] sm:$0xff]  ;;  %v132_v29 = vld [vmem:[%s5194_s0 + $0x310] sm:$0xff] }
  0xb9   :  { %419 = vadd.xlane.f32.xlu1 %v418_v30  ;;  %416 = vadd.xlane.f32.xlu0 %v415_v31  ;;  %v750_v37 = vsel %vm686_vm1, %v749_v33, %v745_v34  ;;  %v457_v33 = vsel %vm162_vm0, %v132_v29, 0.0  ;;  %v135_v34 = vld [vmem:[%s5194_s0 + $0x328] sm:$0xff]  ;;  %v150_v29 = vld [vmem:[%s5194_s0 + $0x3a0] sm:$0xff] }
  0xba   :  { %v216_v38 = vpop.xlane.xlu1 %215  ;;  %v213_v39 = vpop.xlane.xlu0 %212  ;;  %v3592_v42 = vsel %vm1267_vm8, %v750_v37, %v1266_v32  ;;  %v460_v32 = vsel %vm162_vm0, %v133_v28, 0.0  ;;  %v151_v28 = vld [vmem:[%s5194_s0 + $0x3a8] sm:$0xff] }
  0xbb   :  { %v758_v43 = vrot.slane %v216_v38, %v3495_v23  ;;  %v754_v44 = vrot.slane %v213_v39, %v3492_v22  ;;  %v466_v38 = vsel %vm162_vm0, %v135_v34, 0.0  ;;  %v463_v39 = vsel %vm162_vm0, %v134_v35, 0.0 }
  0xbc   :  { %v514_v34 = vsel %vm162_vm0, %v151_v28, 0.0  ;;  %v511_v35 = vsel %vm162_vm0, %v150_v29, 0.0 }
  0xbd   :  { %v759_v47 = vsel %vm686_vm1, %v758_v43, %v754_v44  ;;  %425 = vadd.xlane.f32.xlu1 %v424_v40  ;;  %422 = vadd.xlane.f32.xlu0 %v421_v41  ;;  %v137_v40 = vld [vmem:[%s5194_s0 + $0x338] sm:$0xff]  ;;  %v136_v41 = vld [vmem:[%s5194_s0 + $0x330] sm:$0xff] }
  0xbe   :  { %v222_v48 = vpop.xlane.xlu1 %221  ;;  %v219_v49 = vpop.xlane.xlu0 %218  ;;  %v472_v45 = vsel %vm162_vm0, %v137_v40, 0.0  ;;  %v469_v46 = vsel %vm162_vm0, %v136_v41, 0.0 }
  0xbf   :  { %v767_v52 = vrot.slane %v222_v48, %v3495_v23  ;;  %v763_v53 = vrot.slane %v219_v49, %v3492_v22  ;;  %v138_v48 = vld [vmem:[%s5194_s0 + $0x340] sm:$0xff] }
  0xc1   :  { %v768_v56 = vsel %vm686_vm1, %v767_v52, %v763_v53  ;;  %431 = vadd.xlane.f32.xlu1 %v430_v50  ;;  %428 = vadd.xlane.f32.xlu0 %v427_v51  ;;  %v475_v52 = vsel %vm162_vm0, %v138_v48, 0.0  ;;  %v141_v53 = vld [vmem:[%s5194_s0 + $0x358] sm:$0xff]  ;;  %v154_v48 = vld [vmem:[%s5194_s0 + $0x3c0] sm:$0xff] }
  0xc2   :  { %v1269_v57 = vsel %vm1255_vm2, %v768_v56, %v759_v47  ;;  %v228_v58 = vpop.xlane.xlu1 %227  ;;  %v225_v59 = vpop.xlane.xlu0 %224  ;;  %v139_v47 = vld [vmem:[%s5194_s0 + $0x348] sm:$0xff] }
  0xc3   :  { %v776_v62 = vrot.slane %v228_v58, %v3495_v23  ;;  %v772_v63 = vrot.slane %v225_v59, %v3492_v22  ;;  %v478_v51 = vsel %vm162_vm0, %v139_v47, 0.0  ;;  %v481_v58 = vsel %vm162_vm0, %v140_v54, 0.0  ;;  %v143_v59 = vld [vmem:[%s5194_s0 + $0x368] sm:$0xff] }
  0xc4   :  { %v155_v47 = vld [vmem:[%s5194_s0 + $0x3c8] sm:$0xff] }
  0xc5   :  { %v777_v2 = vsel %vm686_vm1, %v776_v62, %v772_v63  ;;  %437 = vadd.xlane.f32.xlu1 %v436_v60  ;;  %434 = vadd.xlane.f32.xlu0 %v433_v61  ;;  %v142_v60 = vld [vmem:[%s5194_s0 + $0x360] sm:$0xff]  ;;  %v490_v63 = vsel %vm162_vm0, %v143_v59, 0.0  ;;  %v523_v59 = vsel %vm162_vm0, %v154_v48, 0.0 }
  0xc6   :  { %v1270_v3 = vsel %vm1257_vm3, %v777_v2, %v1269_v57  ;;  %v234_v4 = vpop.xlane.xlu1 %233  ;;  %v231_v5 = vpop.xlane.xlu0 %230  ;;  %v484_v57 = vsel %vm162_vm0, %v141_v53, 0.0  ;;  %v487_v0 = vsel %vm162_vm0, %v142_v60, 0.0  ;;  %v144_v2 = vld [vmem:[%s5194_s0 + $0x370] sm:$0xff]  ;;  %v157_v53 = vld [vmem:[%s5194_s0 + $0x3d8] sm:$0xff] }
  0xc7   :  { %v785_v8 = vrot.slane %v234_v4, %v3495_v23  ;;  %v781_v9 = vrot.slane %v231_v5, %v3492_v22  ;;  %v496_v5 = vsel %vm162_vm0, %v145_v1, 0.0 }
  0xc9   :  { %v786_v13 = vsel %vm686_vm1, %v785_v8, %v781_v9  ;;  %443 = vadd.xlane.f32.xlu1 %v442_v6  ;;  %440 = vadd.xlane.f32.xlu0 %v439_v7  ;;  %v493_v6 = vsel %vm162_vm0, %v144_v2, 0.0  ;;  %v147_v7 = vld [vmem:[%s5194_s0 + $0x388] sm:$0xff]  ;;  %v146_v8 = vld [vmem:[%s5194_s0 + $0x380] sm:$0xff] }
  0xca   :  { %v3639_v15 = vsel %vm1259_vm4, %v786_v13, %v1270_v3  ;;  %v3641_v16 = vpop.xlane.xlu1 %239  ;;  %v3643_v17 = vpop.xlane.xlu0 %236  ;;  %v502_v12 = vsel %vm162_vm0, %v147_v7, 0.0  ;;  %v499_v13 = vsel %vm162_vm0, %v146_v8, 0.0 }
  0xcd   :  { %449 = vadd.xlane.f32.xlu1 %v448_v18  ;;  %446 = vadd.xlane.f32.xlu0 %v445_v19  ;;  %v149_v18 = vld [vmem:[%s5194_s0 + $0x398] sm:$0xff]  ;;  %v148_v19 = vld [vmem:[%s5194_s0 + $0x390] sm:$0xff] }
  0xce   :  { %v3653_v24 = vpop.xlane.xlu1 %245  ;;  %v3655_v25 = vpop.xlane.xlu0 %242 }
  0xcf   :  { %v803_v1 = vrot.slane %v3653_v24, %v3495_v23 }
  0xd1   :  { %455 = vadd.xlane.f32.xlu1 %v454_v26  ;;  %452 = vadd.xlane.f32.xlu0 %v451_v27  ;;  %v508_v26 = vsel %vm162_vm0, %v149_v18, 0.0  ;;  %v505_v27 = vsel %vm162_vm0, %v148_v19, 0.0 }
  0xd2   :  { %v3665_v30 = vpop.xlane.xlu1 %251  ;;  %v3667_v31 = vpop.xlane.xlu0 %248 }
  0xd5   :  { %461 = vadd.xlane.f32.xlu1 %v460_v32  ;;  %458 = vadd.xlane.f32.xlu0 %v457_v33 }
  0xd6   :  { %v3677_v36 = vpop.xlane.xlu1 %257  ;;  %v3679_v37 = vpop.xlane.xlu0 %254 }
  0xd9   :  { %467 = vadd.xlane.f32.xlu1 %v466_v38  ;;  %464 = vadd.xlane.f32.xlu0 %v463_v39  ;;  %v153_v38 = vld [vmem:[%s5194_s0 + $0x3b8] sm:$0xff]  ;;  %v152_v39 = vld [vmem:[%s5194_s0 + $0x3b0] sm:$0xff] }
  0xda   :  { %v3689_v43 = vpop.xlane.xlu1 %263  ;;  %v3691_v44 = vpop.xlane.xlu0 %260 }
  0xdb   :  { %v830_v7 = vrot.slane %v3689_v43, %v3495_v23  ;;  %v826_v24 = vrot.slane %v3691_v44, %v3492_v22 }
  0xdd   :  { %473 = vadd.xlane.f32.xlu1 %v472_v45  ;;  %470 = vadd.xlane.f32.xlu0 %v469_v46  ;;  %v520_v45 = vsel %vm162_vm0, %v153_v38, 0.0  ;;  %v517_v46 = vsel %vm162_vm0, %v152_v39, 0.0  ;;  %v160_v38 = vld [vmem:[%s5194_s0 + $0x3f0] sm:$0xff] }
  0xde   :  { %v3701_v49 = vpop.xlane.xlu1 %269  ;;  %v3703_v50 = vpop.xlane.xlu0 %266 }
  0xdf   :  { %v839_v60 = vrot.slane %v3701_v49, %v3495_v23  ;;  %v799_v49 = vrot.slane %v3655_v25, %v3492_v22  ;;  %v808_v25 = vrot.slane %v3667_v31, %v3492_v22 }
  0xe1   :  { %479 = vadd.xlane.f32.xlu1 %v478_v51  ;;  %476 = vadd.xlane.f32.xlu0 %v475_v52  ;;  %v794_v51 = vrot.slane %v3641_v16, %v3495_v23  ;;  %v790_v52 = vrot.slane %v3643_v17, %v3492_v22  ;;  %v156_v16 = vld [vmem:[%s5194_s0 + $0x3d0] sm:$0xff] }
  0xe2   :  { %v3713_v55 = vpop.xlane.xlu1 %275  ;;  %v3715_v56 = vpop.xlane.xlu0 %272 }
  0xe3   :  { %v795_v17 = vsel %vm686_vm1, %v794_v51, %v790_v52  ;;  %v848_v2 = vrot.slane %v3713_v55, %v3495_v23 }
  0xe5   :  { %485 = vadd.xlane.f32.xlu1 %v484_v57  ;;  %482 = vadd.xlane.f32.xlu0 %v481_v58  ;;  %v526_v58 = vsel %vm162_vm0, %v155_v47, 0.0 }
  0xe6   :  { %v3725_v61 = vpop.xlane.xlu1 %281  ;;  %v3727_v62 = vpop.xlane.xlu0 %278 }
  0xe7   :  { %v857_v43 = vrot.slane %v3725_v61, %v3495_v23  ;;  %v853_v44 = vrot.slane %v3727_v62, %v3492_v22 }
  0xe9   :  { %491 = vadd.xlane.f32.xlu1 %v490_v63  ;;  %488 = vadd.xlane.f32.xlu0 %v487_v0  ;;  %v835_v63 = vrot.slane %v3703_v50, %v3492_v22  ;;  %v532_v0 = vsel %vm162_vm0, %v157_v53, 0.0  ;;  %v812_v50 = vrot.slane %v3665_v30, %v3495_v23  ;;  %v821_v30 = vrot.slane %v3677_v36, %v3495_v23 }
  0xea   :  { %v3737_v3 = vpop.xlane.xlu1 %287  ;;  %v3739_v4 = vpop.xlane.xlu0 %284 }
  0xeb   :  { %v840_v18 = vsel %vm686_vm1, %v839_v60, %v835_v63  ;;  %v866_v31 = vrot.slane %v3737_v3, %v3495_v23  ;;  %v862_v36 = vrot.slane %v3739_v4, %v3492_v22  ;;  %v804_v3 = vsel %vm686_vm1, %v803_v1, %v799_v49 }
  0xec   :  { %v813_v39 = vsel %vm686_vm1, %v812_v50, %v808_v25 }
  0xed   :  { %497 = vadd.xlane.f32.xlu1 %v496_v5  ;;  %494 = vadd.xlane.f32.xlu0 %v493_v6  ;;  %v844_v5 = vrot.slane %v3715_v56, %v3492_v22  ;;  %v529_v6 = vsel %vm162_vm0, %v156_v16, 0.0  ;;  %v159_v56 = vld [vmem:[%s5194_s0 + $0x3e8] sm:$0xff] }
  0xee   :  { %v3749_v9 = vpop.xlane.xlu1 %293  ;;  %v3751_v10 = vpop.xlane.xlu0 %290 }
  0xef   :  { %v849_v61 = vsel %vm686_vm1, %v848_v2, %v844_v5  ;;  %v875_v62 = vrot.slane %v3749_v9, %v3495_v23  ;;  %v871_v19 = vrot.slane %v3751_v10, %v3492_v22 }
  0xf1   :  { %503 = vadd.xlane.f32.xlu1 %v502_v12  ;;  %500 = vadd.xlane.f32.xlu0 %v499_v13  ;;  %v158_v12 = vld [vmem:[%s5194_s0 + $0x3e0] sm:$0xff]  ;;  %v817_v13 = vrot.slane %v3679_v37, %v3492_v22  ;;  %v538_v37 = vsel %vm162_vm0, %v159_v56, 0.0 }
  0xf2   :  { %v3761_v20 = vpop.xlane.xlu1 %299  ;;  %v3763_v21 = vpop.xlane.xlu0 %296  ;;  %v535_v29 = vsel %vm162_vm0, %v158_v12, 0.0 }
  0xf3   :  { %v884_v10 = vrot.slane %v3761_v20, %v3495_v23  ;;  %v822_v47 = vsel %vm686_vm1, %v821_v30, %v817_v13  ;;  %v876_v20 = vsel %vm686_vm1, %v875_v62, %v871_v19 }
  0xf5   :  { %509 = vadd.xlane.f32.xlu1 %v508_v26  ;;  %506 = vadd.xlane.f32.xlu0 %v505_v27  ;;  %v1272_v26 = vsel %vm1261_vm5, %v795_v17, %v3639_v15  ;;  %v831_v27 = vsel %vm686_vm1, %v830_v7, %v826_v24  ;;  %v161_v15 = vld [vmem:[%s5194_s0 + $0x3f8] sm:$0xff]  ;;  %v1326_v7 = vsel %vm162_vm0, %v3592_v42, 0.0 }
  0xf6   :  { %v3773_v32 = vpop.xlane.xlu1 %305  ;;  %v3775_v33 = vpop.xlane.xlu0 %302  ;;  %v1276_v9 = vsel %vm1255_vm2, %v840_v18, %v831_v27  ;;  %v1273_v16 = vsel %vm1263_vm6, %v804_v3, %v1272_v26 }
  0xf7   :  { %v889_v48 = vrot.slane %v3775_v33, %v3492_v22 }
  0xf9   :  { %515 = vadd.xlane.f32.xlu1 %v514_v34  ;;  %512 = vadd.xlane.f32.xlu0 %v511_v35  ;;  %v858_v34 = vsel %vm686_vm1, %v857_v43, %v853_v44  ;;  %v880_v35 = vrot.slane %v3763_v21, %v3492_v22  ;;  %v893_v21 = vrot.slane %v3773_v32, %v3495_v23 }
  0xfa   :  { %v3785_v40 = vpop.xlane.xlu1 %311  ;;  %v3787_v41 = vpop.xlane.xlu0 %308  ;;  %v1274_v32 = vsel %vm1265_vm7, %v813_v39, %v1273_v16 }
  0xfb   :  { %v885_v60 = vsel %vm686_vm1, %v884_v10, %v880_v35  ;;  %v1275_v33 = vsel %vm1267_vm8, %v822_v47, %v1274_v32  ;;  %v894_v2 = vsel %vm686_vm1, %v893_v21, %v889_v48  ;;  %v898_v24 = vrot.slane %v3787_v41, %v3492_v22 }
  0xfc   :  { %v1329_v30 = vsel %vm162_vm0, %v1275_v33, 0.0 }
  0xfd   :  { %521 = vadd.xlane.f32.xlu1 %v520_v45  ;;  %518 = vadd.xlane.f32.xlu0 %v517_v46  ;;  %v1277_v45 = vsel %vm1257_vm3, %v849_v61, %v1276_v9  ;;  %v867_v46 = vsel %vm686_vm1, %v866_v31, %v862_v36 }
  0xfe   :  { %v3804_v54 = vpop.xlane.xlu1 %317  ;;  %v3806_v57 = vpop.xlane.xlu0 %314  ;;  %v1278_v51 = vsel %vm1259_vm4, %v858_v34, %v1277_v45 }
  0xff   :  { %v1279_v17 = vsel %vm1261_vm5, %v867_v46, %v1278_v51  ;;  %v907_v1 = vrot.slane %v3806_v57, %v3492_v22  ;;  %v902_v57 = vrot.slane %v3785_v40, %v3495_v23 }
 0x100   :  { %v1280_v63 = vsel %vm1263_vm6, %v876_v20, %v1279_v17 }
 0x101   :  { %527 = vadd.xlane.f32.xlu1 %v526_v58  ;;  %524 = vadd.xlane.f32.xlu0 %v523_v59  ;;  %v544_v58 = vsel %vm162_vm0, %v161_v15, 0.0  ;;  %v541_v59 = vsel %vm162_vm0, %v160_v38, 0.0  ;;  %v903_v18 = vsel %vm686_vm1, %v902_v57, %v898_v24 }
 0x102   :  { %v3834_v55 = vpop.xlane.xlu1 %323  ;;  %v3836_v8 = vpop.xlane.xlu0 %320 }
 0x103   :  { %v920_v5 = vrot.slane %v3834_v55, %v3495_v23 }
 0x105   :  { %533 = vadd.xlane.f32.xlu1 %v532_v0  ;;  %530 = vadd.xlane.f32.xlu0 %v529_v6  ;;  %v911_v0 = vrot.slane %v3804_v54, %v3495_v23  ;;  %v916_v6 = vrot.slane %v3836_v8, %v3492_v22  ;;  %v1281_v54 = vsel %vm1265_vm7, %v885_v60, %v1280_v63 }
 0x106   :  { %v330_v4 = vpop.xlane.xlu1 %329  ;;  %v327_v28 = vpop.xlane.xlu0 %326  ;;  %v1282_v42 = vsel %vm1267_vm8, %v894_v2, %v1281_v54 }
 0x107   :  { %v929_v56 = vrot.slane %v330_v4, %v3495_v23  ;;  %v925_v55 = vrot.slane %v327_v28, %v3492_v22  ;;  %v912_v43 = vsel %vm686_vm1, %v911_v0, %v907_v1  ;;  %v921_v41 = vsel %vm686_vm1, %v920_v5, %v916_v6 }
 0x108   :  { %v1283_v62 = vsel %vm1255_vm2, %v912_v43, %v903_v18 }
 0x109   :  { %539 = vadd.xlane.f32.xlu1 %v538_v37  ;;  %536 = vadd.xlane.f32.xlu0 %v535_v29  ;;  %v930_v31 = vsel %vm686_vm1, %v929_v56, %v925_v55  ;;  %v1332_v37 = vsel %vm162_vm0, %v1282_v42, 0.0  ;;  %v1284_v26 = vsel %vm1257_vm3, %v921_v41, %v1283_v62 }
 0x10a   :  { %v336_v52 = vpop.xlane.xlu1 %335  ;;  %v333_v53 = vpop.xlane.xlu0 %332  ;;  %v1285_v27 = vsel %vm1259_vm4, %v930_v31, %v1284_v26 }
 0x10b   :  { %v938_v25 = vrot.slane %v336_v52, %v3495_v23  ;;  %v934_v8 = vrot.slane %v333_v53, %v3492_v22 }
 0x10d   :  { %545 = vadd.xlane.f32.xlu1 %v544_v58  ;;  %542 = vadd.xlane.f32.xlu0 %v541_v59  ;;  %v939_v19 = vsel %vm686_vm1, %v938_v25, %v934_v8 }
 0x10e   :  { %v342_v49 = vpop.xlane.xlu1 %341  ;;  %v339_v50 = vpop.xlane.xlu0 %338  ;;  %v1286_v9 = vsel %vm1261_vm5, %v939_v19, %v1285_v27 }
 0x10f   :  { %v947_v44 = vrot.slane %v342_v49, %v3495_v23  ;;  %v943_v40 = vrot.slane %v339_v50, %v3492_v22 }
 0x111   :  { %1330 = vadd.xlane.f32.xlu1 %v1329_v30  ;;  %1327 = vadd.xlane.f32.xlu0 %v1326_v7  ;;  %v948_v3 = vsel %vm686_vm1, %v947_v44, %v943_v40 }
 0x112   :  { %v348_v12 = vpop.xlane.xlu1 %347  ;;  %v345_v13 = vpop.xlane.xlu0 %344  ;;  %v1287_v35 = vsel %vm1263_vm6, %v948_v3, %v1286_v9 }
 0x113   :  { %v956_v36 = vrot.slane %v348_v12, %v3495_v23  ;;  %v952_v61 = vrot.slane %v345_v13, %v3492_v22 }
 0x115   :  { %1333 = vadd.xlane.f32.xlu0 %v1332_v37  ;;  %v957_v4 = vsel %vm686_vm1, %v956_v36, %v952_v61 }
 0x116   :  { %v354_v28 = vpop.xlane.xlu1 %353  ;;  %v351_v29 = vpop.xlane.xlu0 %350  ;;  %v1288_v38 = vsel %vm1265_vm7, %v957_v4, %v1287_v35 }
 0x117   :  { %v965_v34 = vrot.slane %v354_v28, %v3495_v23  ;;  %v961_v10 = vrot.slane %v351_v29, %v3492_v22 }
 0x119   :  { %v966_v15 = vsel %vm686_vm1, %v965_v34, %v961_v10 }
 0x11a   :  { %v360_v39 = vpop.xlane.xlu1 %359  ;;  %v357_v45 = vpop.xlane.xlu0 %356  ;;  %v1289_v46 = vsel %vm1267_vm8, %v966_v15, %v1288_v38 }
 0x11b   :  { %v1335_v47 = vsel %vm162_vm0, %v1289_v46, 0.0  ;;  %v974_v0 = vrot.slane %v360_v39, %v3495_v23  ;;  %v970_v1 = vrot.slane %v357_v45, %v3492_v22 }
 0x11c   :  { %1336 = vadd.xlane.f32.xlu1 %v1335_v47 }
 0x11d   :  { %v975_v55 = vsel %vm686_vm1, %v974_v0, %v970_v1 }
 0x11e   :  { %v366_v20 = vpop.xlane.xlu1 %365  ;;  %v363_v21 = vpop.xlane.xlu0 %362 }
 0x11f   :  { %v983_v16 = vrot.slane %v366_v20, %v3495_v23  ;;  %v979_v17 = vrot.slane %v363_v21, %v3492_v22 }
 0x121   :  { %v984_v50 = vsel %vm686_vm1, %v983_v16, %v979_v17 }
 0x122   :  { %v372_v48 = vpop.xlane.xlu1 %371  ;;  %v369_v51 = vpop.xlane.xlu0 %368  ;;  %v1290_v42 = vsel %vm1255_vm2, %v984_v50, %v975_v55 }
 0x123   :  { %v992_v60 = vrot.slane %v372_v48, %v3495_v23  ;;  %v988_v32 = vrot.slane %v369_v51, %v3492_v22 }
 0x125   :  { %v993_v57 = vsel %vm686_vm1, %v992_v60, %v988_v32 }
 0x126   :  { %v378_v52 = vpop.xlane.xlu1 %377  ;;  %v375_v53 = vpop.xlane.xlu0 %374  ;;  %v1291_v44 = vsel %vm1257_vm3, %v993_v57, %v1290_v42 }
 0x127   :  { %v1001_v2 = vrot.slane %v378_v52, %v3495_v23  ;;  %v997_v5 = vrot.slane %v375_v53, %v3492_v22 }
 0x129   :  { %v1002_v25 = vsel %vm686_vm1, %v1001_v2, %v997_v5 }
 0x12a   :  { %v384_v58 = vpop.xlane.xlu1 %383  ;;  %v381_v59 = vpop.xlane.xlu0 %380  ;;  %v1292_v41 = vsel %vm1259_vm4, %v1002_v25, %v1291_v44 }
 0x12b   :  { %v1010_v6 = vrot.slane %v384_v58, %v3495_v23  ;;  %v1006_v49 = vrot.slane %v381_v59, %v3492_v22 }
 0x12d   :  { %v1011_v43 = vsel %vm686_vm1, %v1010_v6, %v1006_v49 }
 0x12e   :  { %v390_v33 = vpop.xlane.xlu1 %389  ;;  %v387_v63 = vpop.xlane.xlu0 %386  ;;  %v1293_v31 = vsel %vm1261_vm5, %v1011_v43, %v1292_v41 }
 0x12f   :  { %v1019_v7 = vrot.slane %v390_v33, %v3495_v23  ;;  %v1015_v54 = vrot.slane %v387_v63, %v3492_v22 }
 0x131   :  { %v1020_v40 = vsel %vm686_vm1, %v1019_v7, %v1015_v54 }
 0x132   :  { %v396_v24 = vpop.xlane.xlu1 %395  ;;  %v393_v56 = vpop.xlane.xlu0 %392  ;;  %v1294_v62 = vsel %vm1263_vm6, %v1020_v40, %v1293_v31 }
 0x133   :  { %v1028_v8 = vrot.slane %v396_v24, %v3495_v23  ;;  %v1024_v30 = vrot.slane %v393_v56, %v3492_v22 }
 0x135   :  { %v1029_v12 = vsel %vm686_vm1, %v1028_v8, %v1024_v30 }
 0x136   :  { %v402_v13 = vpop.xlane.xlu1 %401  ;;  %v399_v18 = vpop.xlane.xlu0 %398  ;;  %v1295_v37 = vsel %vm1265_vm7, %v1029_v12, %v1294_v62 }
 0x137   :  { %v1037_v36 = vrot.slane %v402_v13, %v3495_v23  ;;  %v1033_v61 = vrot.slane %v399_v18, %v3492_v22 }
 0x139   :  { %v1038_v19 = vsel %vm686_vm1, %v1037_v36, %v1033_v61 }
 0x13a   :  { %v408_v26 = vpop.xlane.xlu1 %407  ;;  %v405_v3 = vpop.xlane.xlu0 %404  ;;  %v1296_v27 = vsel %vm1267_vm8, %v1038_v19, %v1295_v37 }
 0x13b   :  { %v1338_v4 = vsel %vm162_vm0, %v1296_v27, 0.0  ;;  %v1046_v48 = vrot.slane %v408_v26, %v3495_v23  ;;  %v1042_v51 = vrot.slane %v405_v3, %v3492_v22 }
 0x13c   :  { %1339 = vadd.xlane.f32.xlu0 %v1338_v4 }
 0x13d   :  { %v1047_v0 = vsel %vm686_vm1, %v1046_v48, %v1042_v51 }
 0x13e   :  { %v414_v28 = vpop.xlane.xlu1 %413  ;;  %v411_v29 = vpop.xlane.xlu0 %410 }
 0x13f   :  { %v1055_v39 = vrot.slane %v414_v28, %v3495_v23  ;;  %v1051_v45 = vrot.slane %v411_v29, %v3492_v22 }
 0x141   :  { %v1056_v16 = vsel %vm686_vm1, %v1055_v39, %v1051_v45 }
 0x142   :  { %v420_v9 = vpop.xlane.xlu1 %419  ;;  %v417_v34 = vpop.xlane.xlu0 %416  ;;  %v1297_v6 = vsel %vm1255_vm2, %v1056_v16, %v1047_v0 }
 0x143   :  { %v1064_v46 = vrot.slane %v420_v9, %v3495_v23  ;;  %v1060_v47 = vrot.slane %v417_v34, %v3492_v22 }
 0x145   :  { %v1065_v32 = vsel %vm686_vm1, %v1064_v46, %v1060_v47 }
 0x146   :  { %v426_v10 = vpop.xlane.xlu1 %425  ;;  %v423_v35 = vpop.xlane.xlu0 %422  ;;  %v1298_v50 = vsel %vm1257_vm3, %v1065_v32, %v1297_v6 }
 0x147   :  { %v1073_v52 = vrot.slane %v426_v10, %v3495_v23  ;;  %v1069_v53 = vrot.slane %v423_v35, %v3492_v22 }
 0x149   :  { %v1074_v1 = vsel %vm686_vm1, %v1073_v52, %v1069_v53 }
 0x14a   :  { %v432_v15 = vpop.xlane.xlu1 %431  ;;  %v429_v38 = vpop.xlane.xlu0 %428  ;;  %v1299_v54 = vsel %vm1259_vm4, %v1074_v1, %v1298_v50 }
 0x14b   :  { %v1082_v58 = vrot.slane %v432_v15, %v3495_v23  ;;  %v1078_v59 = vrot.slane %v429_v38, %v3492_v22 }
 0x14d   :  { %v1083_v49 = vsel %vm686_vm1, %v1082_v58, %v1078_v59 }
 0x14e   :  { %v438_v20 = vpop.xlane.xlu1 %437  ;;  %v435_v21 = vpop.xlane.xlu0 %434  ;;  %v1300_v55 = vsel %vm1261_vm5, %v1083_v49, %v1299_v54 }
 0x14f   :  { %v1091_v17 = vrot.slane %v438_v20, %v3495_v23  ;;  %v1087_v60 = vrot.slane %v435_v21, %v3492_v22 }
 0x151   :  { %v1092_v7 = vsel %vm686_vm1, %v1091_v17, %v1087_v60 }
 0x152   :  { %v444_v33 = vpop.xlane.xlu1 %443  ;;  %v441_v63 = vpop.xlane.xlu0 %440  ;;  %v1301_v30 = vsel %vm1263_vm6, %v1092_v7, %v1300_v55 }
 0x153   :  { %v1100_v2 = vrot.slane %v444_v33, %v3495_v23  ;;  %v1096_v5 = vrot.slane %v441_v63, %v3492_v22 }
 0x155   :  { %v1101_v57 = vsel %vm686_vm1, %v1100_v2, %v1096_v5 }
 0x156   :  { %v450_v24 = vpop.xlane.xlu1 %449  ;;  %v447_v56 = vpop.xlane.xlu0 %446  ;;  %v1302_v43 = vsel %vm1265_vm7, %v1101_v57, %v1301_v30 }
 0x157   :  { %v1109_v25 = vrot.slane %v450_v24, %v3495_v23  ;;  %v1105_v8 = vrot.slane %v447_v56, %v3492_v22  ;;  %v2997_v24 = vld [vmem:[%s5194_s0] sm:$0xff] }
 0x158   :  { %v1358_v56 = vsel %vm162_vm0, %v2997_v24, -inf }
 0x159   :  { %v1110_v42 = vsel %vm686_vm1, %v1109_v25, %v1105_v8  ;;  %v2998_v8 = vld [vmem:[%s5194_s0 + $0x10] sm:$0xff] }
 0x15a   :  { %v456_v44 = vpop.xlane.xlu1 %455  ;;  %v453_v40 = vpop.xlane.xlu0 %452  ;;  %v1303_v41 = vsel %vm1267_vm8, %v1110_v42, %v1302_v43  ;;  %v1364_v30 = vsel %vm162_vm0, %v2998_v8, -inf  ;;  %v3006_v8 = vld [vmem:[%s5194_s0 + $0x8] sm:$0xff] }
 0x15b   :  { %v1341_v12 = vsel %vm162_vm0, %v1303_v41, 0.0  ;;  %v1118_v9 = vrot.slane %v456_v44, %v3495_v23  ;;  %v1114_v34 = vrot.slane %v453_v40, %v3492_v22  ;;  %v2999_v44 = vld [vmem:[%s5194_s0 + $0x20] sm:$0xff] }
 0x15c   :  { %1342 = vadd.xlane.f32.xlu1 %v1341_v12  ;;  %v1370_v40 = vsel %vm162_vm0, %v2999_v44, -inf  ;;  %v3008_v44 = vld [vmem:[%s5194_s0 + $0x18] sm:$0xff] }
 0x15d   :  { %v1119_v48 = vsel %vm686_vm1, %v1118_v9, %v1114_v34 }
 0x15e   :  { %v462_v13 = vpop.xlane.xlu1 %461  ;;  %v459_v18 = vpop.xlane.xlu0 %458 }
 0x15f   :  { %v1127_v26 = vrot.slane %v462_v13, %v3495_v23  ;;  %v1123_v3 = vrot.slane %v459_v18, %v3492_v22  ;;  %v3000_v13 = vld [vmem:[%s5194_s0 + $0x30] sm:$0xff] }
 0x160   :  { %v1376_v18 = vsel %vm162_vm0, %v3000_v13, -inf  ;;  %v3010_v13 = vld [vmem:[%s5194_s0 + $0x28] sm:$0xff] }
 0x161   :  { %v1128_v39 = vsel %vm686_vm1, %v1127_v26, %v1123_v3 }
 0x162   :  { %v468_v31 = vpop.xlane.xlu1 %467  ;;  %v465_v36 = vpop.xlane.xlu0 %464  ;;  %v1304_v58 = vsel %vm1255_vm2, %v1128_v39, %v1119_v48 }
 0x163   :  { %v1136_v27 = vrot.slane %v468_v31, %v3495_v23  ;;  %v1132_v4 = vrot.slane %v465_v36, %v3492_v22 }
 0x165   :  { %v1137_v47 = vsel %vm686_vm1, %v1136_v27, %v1132_v4 }
 0x166   :  { %v474_v61 = vpop.xlane.xlu1 %473  ;;  %v471_v62 = vpop.xlane.xlu0 %470  ;;  %v1305_v16 = vsel %vm1257_vm3, %v1137_v47, %v1304_v58 }
 0x167   :  { %v1145_v10 = vrot.slane %v474_v61, %v3495_v23  ;;  %v1141_v35 = vrot.slane %v471_v62, %v3492_v22 }
 0x169   :  { %v1146_v51 = vsel %vm686_vm1, %v1145_v10, %v1141_v35 }
 0x16a   :  { %v480_v19 = vpop.xlane.xlu1 %479  ;;  %v477_v37 = vpop.xlane.xlu0 %476  ;;  %v1306_v60 = vsel %vm1259_vm4, %v1146_v51, %v1305_v16 }
 0x16b   :  { %v1154_v15 = vrot.slane %v480_v19, %v3495_v23  ;;  %v1150_v38 = vrot.slane %v477_v37, %v3492_v22  ;;  %v3001_v19 = vld [vmem:[%s5194_s0 + $0x40] sm:$0xff] }
 0x16c   :  { %v1382_v37 = vsel %vm162_vm0, %v3001_v19, -inf  ;;  %v3013_v19 = vld [vmem:[%s5194_s0 + $0xc0] sm:$0xff] }
 0x16d   :  { %v1155_v59 = vsel %vm686_vm1, %v1154_v15, %v1150_v38 }
 0x16e   :  { %v486_v28 = vpop.xlane.xlu1 %485  ;;  %v483_v29 = vpop.xlane.xlu0 %482  ;;  %v1307_v0 = vsel %vm1261_vm5, %v1155_v59, %v1306_v60  ;;  %v3003_v60 = vld [vmem:[%s5194_s0 + $0x60] sm:$0xff] }
 0x16f   :  { %v1163_v45 = vrot.slane %v486_v28, %v3495_v23  ;;  %v1159_v46 = vrot.slane %v483_v29, %v3492_v22 }
 0x171   :  { %v1164_v17 = vsel %vm686_vm1, %v1163_v45, %v1159_v46  ;;  %v3002_v45 = vld [vmem:[%s5194_s0 + $0x50] sm:$0xff] }
 0x172   :  { %v492_v20 = vpop.xlane.xlu1 %491  ;;  %v489_v21 = vpop.xlane.xlu0 %488  ;;  %v1308_v5 = vsel %vm1263_vm6, %v1164_v17, %v1307_v0  ;;  %v1388_v46 = vsel %vm162_vm0, %v3002_v45, -inf }
 0x173   :  { %v1172_v52 = vrot.slane %v492_v20, %v3495_v23  ;;  %v1168_v53 = vrot.slane %v489_v21, %v3492_v22 }
 0x175   :  { %v1173_v32 = vsel %vm686_vm1, %v1172_v52, %v1168_v53 }
 0x176   :  { %v498_v33 = vpop.xlane.xlu1 %497  ;;  %v495_v63 = vpop.xlane.xlu0 %494  ;;  %v1309_v49 = vsel %vm1265_vm7, %v1173_v32, %v1308_v5  ;;  %v1394_v32 = vsel %vm162_vm0, %v3003_v60, -inf  ;;  %v3027_v60 = vld [vmem:[%s5194_s0 + $0x130] sm:$0xff] }
 0x177   :  { %v1181_v1 = vrot.slane %v498_v33, %v3495_v23  ;;  %v1177_v2 = vrot.slane %v495_v63, %v3492_v22 }
 0x179   :  { %v1182_v6 = vsel %vm686_vm1, %v1181_v1, %v1177_v2 }
 0x17a   :  { %v504_v50 = vpop.xlane.xlu1 %503  ;;  %v501_v7 = vpop.xlane.xlu0 %500  ;;  %v1310_v54 = vsel %vm1267_vm8, %v1182_v6, %v1309_v49 }
 0x17b   :  { %v1344_v57 = vsel %vm162_vm0, %v1310_v54, 0.0  ;;  %v1190_v28 = vrot.slane %v504_v50, %v3495_v23  ;;  %v1186_v29 = vrot.slane %v501_v7, %v3492_v22  ;;  %v3004_v50 = vld [vmem:[%s5194_s0 + $0x70] sm:$0xff] }
 0x17c   :  { %1345 = vadd.xlane.f32.xlu0 %v1344_v57  ;;  %v1400_v7 = vsel %vm162_vm0, %v3004_v50, -inf  ;;  %v3032_v50 = vld [vmem:[%s5194_s0 + $0xd8] sm:$0xff] }
 0x17d   :  { %v1191_v48 = vsel %vm686_vm1, %v1190_v28, %v1186_v29  ;;  %v3016_v28 = vld [vmem:[%s5194_s0 + $0x58] sm:$0xff] }
 0x17e   :  { %v510_v55 = vpop.xlane.xlu1 %509  ;;  %v507_v25 = vpop.xlane.xlu0 %506  ;;  %v1391_v29 = vsel %vm162_vm0, %v3016_v28, -inf  ;;  %v3046_v28 = vld [vmem:[%s5194_s0 + $0x148] sm:$0xff] }
 0x17f   :  { %v1199_v61 = vrot.slane %v510_v55, %v3495_v23  ;;  %v1195_v62 = vrot.slane %v507_v25, %v3492_v22  ;;  %v3005_v55 = vld [vmem:[%s5194_s0 + $0x80] sm:$0xff] }
 0x180   :  { %1359 = vmax.xlane.f32.xlu0 %v1358_v56  ;;  %v1406_v25 = vsel %vm162_vm0, %v3005_v55, -inf  ;;  %v3035_v55 = vld [vmem:[%s5194_s0 + $0x170] sm:$0xff] }
 0x181   :  { %v1200_v15 = vsel %vm686_vm1, %v1199_v61, %v1195_v62  ;;  %v3012_v61 = vld [vmem:[%s5194_s0 + $0x38] sm:$0xff] }
 0x182   :  { %v516_v42 = vpop.xlane.xlu1 %515  ;;  %v513_v43 = vpop.xlane.xlu0 %512  ;;  %v1311_v58 = vsel %vm1255_vm2, %v1200_v15, %v1191_v48  ;;  %v1379_v62 = vsel %vm162_vm0, %v3012_v61, -inf  ;;  %v3019_v15 = vld [vmem:[%s5194_s0 + $0xf0] sm:$0xff]  ;;  %v3042_v61 = vld [vmem:[%s5194_s0 + $0x128] sm:$0xff] }
 0x183   :  { %v1208_v26 = vrot.slane %v516_v42, %v3495_v23  ;;  %v1204_v3 = vrot.slane %v513_v43, %v3492_v22  ;;  %v3007_v42 = vld [vmem:[%s5194_s0 + $0x90] sm:$0xff] }
 0x184   :  { %1365 = vmax.xlane.f32.xlu0 %v1364_v30  ;;  %v1361_v30 = vsel %vm162_vm0, %v3006_v8, -inf  ;;  %v1412_v43 = vsel %vm162_vm0, %v3007_v42, -inf  ;;  %v3023_v48 = vld [vmem:[%s5194_s0 + $0x110] sm:$0xff]  ;;  %v3036_v8 = vld [vmem:[%s5194_s0 + $0xf8] sm:$0xff]  ;;  %v3037_v42 = vld [vmem:[%s5194_s0 + $0x180] sm:$0xff] }
 0x185   :  { %v1209_v47 = vsel %vm686_vm1, %v1208_v26, %v1204_v3  ;;  %v3014_v26 = vld [vmem:[%s5194_s0 + $0x48] sm:$0xff] }
 0x186   :  { %v522_v41 = vpop.xlane.xlu1 %521  ;;  %v519_v12 = vpop.xlane.xlu0 %518  ;;  %v1312_v16 = vsel %vm1257_vm3, %v1209_v47, %v1311_v58  ;;  %v1385_v3 = vsel %vm162_vm0, %v3014_v26, -inf  ;;  %v3025_v58 = vld [vmem:[%s5194_s0 + $0x120] sm:$0xff]  ;;  %v3044_v26 = vld [vmem:[%s5194_s0 + $0x138] sm:$0xff] }
 0x187   :  { %v1217_v9 = vrot.slane %v522_v41, %v3495_v23  ;;  %v1213_v34 = vrot.slane %v519_v12, %v3492_v22  ;;  %v3009_v41 = vld [vmem:[%s5194_s0 + $0xa0] sm:$0xff] }
 0x188   :  { %1371 = vmax.xlane.f32.xlu0 %v1370_v40  ;;  %v1367_v40 = vsel %vm162_vm0, %v3008_v44, -inf  ;;  %v1418_v12 = vsel %vm162_vm0, %v3009_v41, -inf  ;;  %v3038_v44 = vld [vmem:[%s5194_s0 + $0x108] sm:$0xff]  ;;  %v3039_v41 = vld [vmem:[%s5194_s0 + $0x190] sm:$0xff] }
 0x189   :  { %v1218_v51 = vsel %vm686_vm1, %v1217_v9, %v1213_v34  ;;  %v3017_v9 = vld [vmem:[%s5194_s0 + $0xe0] sm:$0xff] }
 0x18a   :  { %v528_v31 = vpop.xlane.xlu1 %527  ;;  %v525_v36 = vpop.xlane.xlu0 %524  ;;  %v1313_v33 = vsel %vm1259_vm4, %v1218_v51, %v1312_v16  ;;  %v1442_v34 = vsel %vm162_vm0, %v3017_v9, -inf  ;;  %v1460_v51 = vsel %vm162_vm0, %v3023_v48, -inf  ;;  %v3026_v16 = vld [vmem:[%s5194_s0 + $0xa8] sm:$0xff]  ;;  %v3047_v9 = vld [vmem:[%s5194_s0 + $0x1d0] sm:$0xff] }
 0x18b   :  { %v1226_v10 = vrot.slane %v528_v31, %v3495_v23  ;;  %v1222_v35 = vrot.slane %v525_v36, %v3492_v22  ;;  %v3011_v31 = vld [vmem:[%s5194_s0 + $0xb0] sm:$0xff] }
 0x18c   :  { %1377 = vmax.xlane.f32.xlu0 %v1376_v18  ;;  %v1373_v18 = vsel %vm162_vm0, %v3010_v13, -inf  ;;  %v1424_v36 = vsel %vm162_vm0, %v3011_v31, -inf  ;;  %v3040_v13 = vld [vmem:[%s5194_s0 + $0x118] sm:$0xff]  ;;  %v3041_v31 = vld [vmem:[%s5194_s0 + $0x1a0] sm:$0xff] }
 0x18d   :  { %v1227_v59 = vsel %vm686_vm1, %v1226_v10, %v1222_v35  ;;  %v3018_v10 = vld [vmem:[%s5194_s0 + $0x68] sm:$0xff] }
 0x18e   :  { %v534_v27 = vpop.xlane.xlu1 %533  ;;  %v531_v4 = vpop.xlane.xlu0 %530  ;;  %v1314_v2 = vsel %vm1261_vm5, %v1227_v59, %v1313_v33  ;;  %v1397_v35 = vsel %vm162_vm0, %v3018_v10, -inf  ;;  %v1466_v59 = vsel %vm162_vm0, %v3025_v58, -inf  ;;  %v3028_v33 = vld [vmem:[%s5194_s0 + $0xb8] sm:$0xff]  ;;  %v3054_v58 = vld [vmem:[%s5194_s0 + $0x188] sm:$0xff] }
 0x18f   :  { %v1235_v38 = vrot.slane %v534_v27, %v3495_v23  ;;  %v1231_v39 = vrot.slane %v531_v4, %v3492_v22  ;;  %v3015_v27 = vld [vmem:[%s5194_s0 + $0xd0] sm:$0xff]  ;;  %v3048_v10 = vld [vmem:[%s5194_s0 + $0x158] sm:$0xff] }
 0x190   :  { %1383 = vmax.xlane.f32.xlu0 %v1382_v37  ;;  %v1430_v37 = vsel %vm162_vm0, %v3013_v19, -inf  ;;  %v1436_v4 = vsel %vm162_vm0, %v3015_v27, -inf  ;;  %v3043_v19 = vld [vmem:[%s5194_s0 + $0x1b0] sm:$0xff]  ;;  %v3045_v27 = vld [vmem:[%s5194_s0 + $0x1c0] sm:$0xff] }
 0x191   :  { %v1236_v17 = vsel %vm686_vm1, %v1235_v38, %v1231_v39  ;;  %v1448_v38 = vsel %vm162_vm0, %v3019_v15, -inf  ;;  %v3020_v39 = vld [vmem:[%s5194_s0 + $0x78] sm:$0xff]  ;;  %v3049_v15 = vld [vmem:[%s5194_s0 + $0x1e0] sm:$0xff] }
 0x192   :  { %v540_v20 = vpop.xlane.xlu1 %539  ;;  %v537_v21 = vpop.xlane.xlu0 %536  ;;  %v1315_v49 = vsel %vm1263_vm6, %v1236_v17, %v1314_v2  ;;  %v1403_v45 = vsel %vm162_vm0, %v3020_v39, -inf  ;;  %v1421_v17 = vsel %vm162_vm0, %v3026_v16, -inf  ;;  %v3030_v2 = vld [vmem:[%s5194_s0 + $0xc8] sm:$0xff] }
 0x193   :  { %v1244_v52 = vrot.slane %v540_v20, %v3495_v23  ;;  %v1240_v53 = vrot.slane %v537_v21, %v3492_v22  ;;  %v3022_v20 = vld [vmem:[%s5194_s0 + $0x88] sm:$0xff] }
 0x194   :  { %1389 = vmax.xlane.f32.xlu0 %v1388_v46  ;;  %v3021_v46 = vld [vmem:[%s5194_s0 + $0x100] sm:$0xff]  ;;  %v1409_v21 = vsel %vm162_vm0, %v3022_v20, -inf  ;;  %v3050_v39 = vld [vmem:[%s5194_s0 + $0x168] sm:$0xff] }
 0x195   :  { %v1245_v63 = vsel %vm686_vm1, %v1244_v52, %v1240_v53  ;;  %v1454_v47 = vsel %vm162_vm0, %v3021_v46, -inf  ;;  %v3024_v52 = vld [vmem:[%s5194_s0 + $0x98] sm:$0xff] }
 0x196   :  { %v546_v0 = vpop.xlane.xlu1 %545  ;;  %v543_v1 = vpop.xlane.xlu0 %542  ;;  %v1316_v57 = vsel %vm1265_vm7, %v1245_v63, %v1315_v49  ;;  %v1415_v53 = vsel %vm162_vm0, %v3024_v52, -inf  ;;  %v1427_v63 = vsel %vm162_vm0, %v3028_v33, -inf  ;;  %v3053_v52 = vld [vmem:[%s5194_s0 + $0x200] sm:$0xff] }
 0x197   :  { %v1253_v5 = vrot.slane %v546_v0, %v3495_v23  ;;  %v1249_v6 = vrot.slane %v543_v1, %v3492_v22  ;;  %v3029_v0 = vld [vmem:[%s5194_s0 + $0x140] sm:$0xff] }
 0x198   :  { %1395 = vmax.xlane.f32.xlu0 %v1394_v32  ;;  %v1472_v32 = vsel %vm162_vm0, %v3027_v60, -inf  ;;  %v1478_v1 = vsel %vm162_vm0, %v3029_v0, -inf  ;;  %v3057_v0 = vld [vmem:[%s5194_s0 + $0x220] sm:$0xff] }
 0x199   :  { %v1254_v54 = vsel %vm686_vm1, %v1253_v5, %v1249_v6  ;;  %v1433_v5 = vsel %vm162_vm0, %v3030_v2, -inf  ;;  %v3031_v6 = vld [vmem:[%s5194_s0 + $0x150] sm:$0xff]  ;;  %v3058_v2 = vld [vmem:[%s5194_s0 + $0x1a8] sm:$0xff] }
 0x19a   :  { %v1317_v24 = vsel %vm1267_vm8, %v1254_v54, %v1316_v57  ;;  %v1484_v49 = vsel %vm162_vm0, %v3031_v6, -inf  ;;  %v3033_v54 = vld [vmem:[%s5194_s0 + $0x160] sm:$0xff]  ;;  %v4289_v46 = vpop.xlane.xlu0 %1327 }
 0x19b   :  { %v1347_v56 = vsel %vm162_vm0, %v1317_v24, 0.0  ;;  %v1490_v57 = vsel %vm162_vm0, %v3033_v54, -inf  ;;  %v3034_v24 = vld [vmem:[%s5194_s0 + $0xe8] sm:$0xff] }
 0x19c   :  { %1401 = vmax.xlane.f32.xlu0 %v1400_v7  ;;  %1348 = vadd.xlane.f32.xlu1 %v1347_v56  ;;  %v1439_v7 = vsel %vm162_vm0, %v3032_v50, -inf  ;;  %v1445_v56 = vsel %vm162_vm0, %v3034_v24, -inf  ;;  %v3061_v24 = vld [vmem:[%s5194_s0 + $0x240] sm:$0xff] }
 0x1a0   :  { %1407 = vmax.xlane.f32.xlu0 %v1406_v25  ;;  %1362 = vmax.xlane.f32.xlu1 %v1361_v30  ;;  %v1496_v25 = vsel %vm162_vm0, %v3035_v55, -inf  ;;  %v1451_v30 = vsel %vm162_vm0, %v3036_v8, -inf  ;;  %v3062_v55 = vld [vmem:[%s5194_s0 + $0x1c8] sm:$0xff] }
 0x1a4   :  { %1413 = vmax.xlane.f32.xlu0 %v1412_v43  ;;  %1368 = vmax.xlane.f32.xlu1 %v1367_v40  ;;  %v1502_v43 = vsel %vm162_vm0, %v3037_v42, -inf  ;;  %v1457_v40 = vsel %vm162_vm0, %v3038_v44, -inf }
 0x1a8   :  { %1419 = vmax.xlane.f32.xlu0 %v1418_v12  ;;  %1374 = vmax.xlane.f32.xlu1 %v1373_v18  ;;  %v1508_v12 = vsel %vm162_vm0, %v3039_v41, -inf  ;;  %v1463_v18 = vsel %vm162_vm0, %v3040_v13, -inf  ;;  %v3065_v41 = vld [vmem:[%s5194_s0 + $0x260] sm:$0xff]  ;;  %v3066_v13 = vld [vmem:[%s5194_s0 + $0x1e8] sm:$0xff] }
 0x1ac   :  { %1425 = vmax.xlane.f32.xlu0 %v1424_v36  ;;  %1380 = vmax.xlane.f32.xlu1 %v1379_v62  ;;  %v1514_v36 = vsel %vm162_vm0, %v3041_v31, -inf  ;;  %v1469_v62 = vsel %vm162_vm0, %v3042_v61, -inf  ;;  %v4369_v31 = vpop.xlane.xlu1 %1330  ;;  %v3067_v61 = vld [vmem:[%s5194_s0 + $0x270] sm:$0xff] }
 0x1b0   :  { %1431 = vmax.xlane.f32.xlu0 %v1430_v37  ;;  %1386 = vmax.xlane.f32.xlu1 %v1385_v3  ;;  %v1520_v37 = vsel %vm162_vm0, %v3043_v19, -inf  ;;  %v1475_v3 = vsel %vm162_vm0, %v3044_v26, -inf  ;;  %v3068_v19 = vld [vmem:[%s5194_s0 + $0x1f8] sm:$0xff]  ;;  %v4381_v26 = vpop.xlane.xlu1 %1336 }
 0x1b4   :  { %1437 = vmax.xlane.f32.xlu0 %v1436_v4  ;;  %1392 = vmax.xlane.f32.xlu1 %v1391_v29  ;;  %v1526_v4 = vsel %vm162_vm0, %v3045_v27, -inf  ;;  %v1481_v29 = vsel %vm162_vm0, %v3046_v28, -inf  ;;  %v3069_v27 = vld [vmem:[%s5194_s0 + $0x280] sm:$0xff]  ;;  %v3070_v28 = vld [vmem:[%s5194_s0 + $0x208] sm:$0xff] }
 0x1b8   :  { %1443 = vmax.xlane.f32.xlu0 %v1442_v34  ;;  %1398 = vmax.xlane.f32.xlu1 %v1397_v35  ;;  %v1532_v34 = vsel %vm162_vm0, %v3047_v9, -inf  ;;  %v1487_v35 = vsel %vm162_vm0, %v3048_v10, -inf  ;;  %v3071_v10 = vld [vmem:[%s5194_s0 + $0x290] sm:$0xff] }
 0x1bc   :  { %1449 = vmax.xlane.f32.xlu0 %v1448_v38  ;;  %1404 = vmax.xlane.f32.xlu1 %v1403_v45  ;;  %v1538_v38 = vsel %vm162_vm0, %v3049_v15, -inf  ;;  %v1493_v45 = vsel %vm162_vm0, %v3050_v39, -inf  ;;  %v3072_v15 = vld [vmem:[%s5194_s0 + $0x218] sm:$0xff] }
 0x1c0   :  { %1455 = vmax.xlane.f32.xlu0 %v1454_v47  ;;  %1410 = vmax.xlane.f32.xlu1 %v1409_v21  ;;  %v3051_v47 = vld [vmem:[%s5194_s0 + $0x1f0] sm:$0xff]  ;;  %v3052_v21 = vld [vmem:[%s5194_s0 + $0x178] sm:$0xff] }
 0x1c1   :  { %v1544_v20 = vsel %vm162_vm0, %v3051_v47, -inf  ;;  %v1499_v48 = vsel %vm162_vm0, %v3052_v21, -inf  ;;  %v3073_v47 = vld [vmem:[%s5194_s0 + $0x2a0] sm:$0xff]  ;;  %v3074_v21 = vld [vmem:[%s5194_s0 + $0x228] sm:$0xff] }
 0x1c4   :  { %1461 = vmax.xlane.f32.xlu0 %v1460_v51  ;;  %1416 = vmax.xlane.f32.xlu1 %v1415_v53  ;;  %v4299_v51 = vpop.xlane.xlu0 %1333  ;;  %v1550_v53 = vsel %vm162_vm0, %v3053_v52, -inf }
 0x1c8   :  { %1467 = vmax.xlane.f32.xlu0 %v1466_v59  ;;  %1422 = vmax.xlane.f32.xlu1 %v1421_v17  ;;  %v1505_v59 = vsel %vm162_vm0, %v3054_v58, -inf  ;;  %v4309_v16 = vpop.xlane.xlu0 %1339  ;;  %v3055_v17 = vld [vmem:[%s5194_s0 + $0x210] sm:$0xff] }
 0x1c9   :  { %v1556_v60 = vsel %vm162_vm0, %v3055_v17, -inf }
 0x1cc   :  { %1473 = vmax.xlane.f32.xlu0 %v1472_v32  ;;  %1428 = vmax.xlane.f32.xlu1 %v1427_v63  ;;  %v3056_v32 = vld [vmem:[%s5194_s0 + $0x198] sm:$0xff] }
 0x1cd   :  { %v1511_v33 = vsel %vm162_vm0, %v3056_v32, -inf }
 0x1d0   :  { %1479 = vmax.xlane.f32.xlu0 %v1478_v1  ;;  %1434 = vmax.xlane.f32.xlu1 %v1433_v5  ;;  %v1562_v1 = vsel %vm162_vm0, %v3057_v0, -inf  ;;  %v1517_v5 = vsel %vm162_vm0, %v3058_v2, -inf }
 0x1d4   :  { %1485 = vmax.xlane.f32.xlu0 %v1484_v49  ;;  %1440 = vmax.xlane.f32.xlu1 %v1439_v7  ;;  %v3059_v49 = vld [vmem:[%s5194_s0 + $0x230] sm:$0xff]  ;;  %v3060_v7 = vld [vmem:[%s5194_s0 + $0x1b8] sm:$0xff] }
 0x1d5   :  { %v1568_v50 = vsel %vm162_vm0, %v3059_v49, -inf  ;;  %v1523_v54 = vsel %vm162_vm0, %v3060_v7, -inf }
 0x1d8   :  { %1491 = vmax.xlane.f32.xlu0 %v1490_v57  ;;  %1446 = vmax.xlane.f32.xlu1 %v1445_v56  ;;  %v1574_v56 = vsel %vm162_vm0, %v3061_v24, -inf }
 0x1dc   :  { %1497 = vmax.xlane.f32.xlu0 %v1496_v25  ;;  %1452 = vmax.xlane.f32.xlu1 %v1451_v30  ;;  %v1529_v25 = vsel %vm162_vm0, %v3062_v55, -inf  ;;  %v3063_v30 = vld [vmem:[%s5194_s0 + $0x250] sm:$0xff] }
 0x1dd   :  { %v1580_v42 = vsel %vm162_vm0, %v3063_v30, -inf  ;;  %v3079_v30 = vld [vmem:[%s5194_s0 + $0x258] sm:$0xff] }
 0x1e0   :  { %1503 = vmax.xlane.f32.xlu0 %v1502_v43  ;;  %1458 = vmax.xlane.f32.xlu1 %v1457_v40  ;;  %v3064_v43 = vld [vmem:[%s5194_s0 + $0x1d8] sm:$0xff] }
 0x1e1   :  { %v1535_v44 = vsel %vm162_vm0, %v3064_v43, -inf  ;;  %v3080_v43 = vld [vmem:[%s5194_s0 + $0x2d0] sm:$0xff] }
 0x1e4   :  { %1509 = vmax.xlane.f32.xlu0 %v1508_v12  ;;  %1464 = vmax.xlane.f32.xlu1 %v1463_v18  ;;  %v1586_v12 = vsel %vm162_vm0, %v3065_v41, -inf  ;;  %v1541_v18 = vsel %vm162_vm0, %v3066_v13, -inf }
 0x1e5   :  { %v4393_v9 = vpop.xlane.xlu1 %1342 }
 0x1e8   :  { %1515 = vmax.xlane.f32.xlu0 %v1514_v36  ;;  %1470 = vmax.xlane.f32.xlu1 %v1469_v62  ;;  %v1592_v62 = vsel %vm162_vm0, %v3067_v61, -inf }
 0x1ec   :  { %1521 = vmax.xlane.f32.xlu0 %v1520_v37  ;;  %1476 = vmax.xlane.f32.xlu1 %v1475_v3  ;;  %v1547_v37 = vsel %vm162_vm0, %v3068_v19, -inf }
 0x1f0   :  { %1527 = vmax.xlane.f32.xlu0 %v1526_v4  ;;  %1482 = vmax.xlane.f32.xlu1 %v1481_v29  ;;  %v1598_v4 = vsel %vm162_vm0, %v3069_v27, -inf  ;;  %v1553_v29 = vsel %vm162_vm0, %v3070_v28, -inf }
 0x1f4   :  { %1533 = vmax.xlane.f32.xlu0 %v1532_v34  ;;  %1488 = vmax.xlane.f32.xlu1 %v1487_v35  ;;  %v1604_v35 = vsel %vm162_vm0, %v3071_v10, -inf }
 0x1f8   :  { %1539 = vmax.xlane.f32.xlu0 %v1538_v38  ;;  %1494 = vmax.xlane.f32.xlu1 %v1493_v45  ;;  %v1559_v38 = vsel %vm162_vm0, %v3072_v15, -inf }
 0x1fc   :  { %1545 = vmax.xlane.f32.xlu0 %v1544_v20  ;;  %1500 = vmax.xlane.f32.xlu1 %v1499_v48  ;;  %v1610_v20 = vsel %vm162_vm0, %v3073_v47, -inf  ;;  %v1565_v48 = vsel %vm162_vm0, %v3074_v21, -inf }
 0x200   :  { %1551 = vmax.xlane.f32.xlu0 %v1550_v53  ;;  %1506 = vmax.xlane.f32.xlu1 %v1505_v59  ;;  %v3075_v59 = vld [vmem:[%s5194_s0 + $0x2b0] sm:$0xff] }
 0x201   :  { %v1616_v17 = vsel %vm162_vm0, %v3075_v59, -inf }
 0x204   :  { %1557 = vmax.xlane.f32.xlu0 %v1556_v60  ;;  %1512 = vmax.xlane.f32.xlu1 %v1511_v33  ;;  %v3076_v60 = vld [vmem:[%s5194_s0 + $0x238] sm:$0xff] }
 0x205   :  { %v4319_v63 = vpop.xlane.xlu0 %1345  ;;  %v1571_v32 = vsel %vm162_vm0, %v3076_v60, -inf }
 0x208   :  { %1563 = vmax.xlane.f32.xlu0 %v1562_v1  ;;  %1518 = vmax.xlane.f32.xlu1 %v1517_v5 }
 0x209   :  { %v4329_v6 = vpop.xlane.xlu0 %1359 }
 0x20a   :  { %v1873_v52 = vrot.slane %v4329_v6, %v3492_v22  ;;  %v3077_v6 = vld [vmem:[%s5194_s0 + $0x248] sm:$0xff] }
 0x20b   :  { %v1577_v49 = vsel %vm162_vm0, %v3077_v6, -inf }
 0x20c   :  { %1569 = vmax.xlane.f32.xlu0 %v1568_v50  ;;  %1524 = vmax.xlane.f32.xlu1 %v1523_v54  ;;  %v3078_v50 = vld [vmem:[%s5194_s0 + $0x2c0] sm:$0xff] }
 0x20d   :  { %v4339_v57 = vpop.xlane.xlu0 %1365  ;;  %v1622_v7 = vsel %vm162_vm0, %v3078_v50, -inf }
 0x20e   :  { %v1882_v0 = vrot.slane %v4339_v57, %v3492_v22 }
 0x210   :  { %1575 = vmax.xlane.f32.xlu0 %v1574_v56  ;;  %1530 = vmax.xlane.f32.xlu1 %v1529_v25 }
 0x211   :  { %v4349_v8 = vpop.xlane.xlu0 %1371 }
 0x212   :  { %v1891_v57 = vrot.slane %v4349_v8, %v3492_v22  ;;  %v1628_v8 = vsel %vm162_vm0, %v3080_v43, -inf }
 0x214   :  { %1581 = vmax.xlane.f32.xlu0 %v1580_v42  ;;  %1536 = vmax.xlane.f32.xlu1 %v1535_v44  ;;  %v1583_v42 = vsel %vm162_vm0, %v3079_v30, -inf }
 0x215   :  { %v4359_v40 = vpop.xlane.xlu0 %1377 }
 0x216   :  { %v1900_v41 = vrot.slane %v4359_v40, %v3492_v22 }
 0x218   :  { %1587 = vmax.xlane.f32.xlu0 %v1586_v12  ;;  %1542 = vmax.xlane.f32.xlu1 %v1541_v18 }
 0x219   :  { %v4371_v36 = vpop.xlane.xlu0 %1383 }
 0x21c   :  { %1593 = vmax.xlane.f32.xlu0 %v1592_v62  ;;  %1548 = vmax.xlane.f32.xlu1 %v1547_v37  ;;  %v3081_v62 = vld [vmem:[%s5194_s0 + $0x268] sm:$0xff]  ;;  %v3082_v37 = vld [vmem:[%s5194_s0 + $0x2e0] sm:$0xff] }
 0x21d   :  { %v4383_v3 = vpop.xlane.xlu0 %1389  ;;  %v1589_v19 = vsel %vm162_vm0, %v3081_v62, -inf  ;;  %v1634_v40 = vsel %vm162_vm0, %v3082_v37, -inf  ;;  %v3094_v62 = vld [vmem:[%s5194_s0 + $0x390] sm:$0xff] }
 0x220   :  { %1599 = vmax.xlane.f32.xlu0 %v1598_v4  ;;  %1554 = vmax.xlane.f32.xlu1 %v1553_v29 }
 0x221   :  { %v4395_v34 = vpop.xlane.xlu0 %1395 }
 0x224   :  { %1605 = vmax.xlane.f32.xlu0 %v1604_v35  ;;  %1560 = vmax.xlane.f32.xlu1 %v1559_v38  ;;  %v3083_v35 = vld [vmem:[%s5194_s0 + $0x278] sm:$0xff]  ;;  %v3084_v38 = vld [vmem:[%s5194_s0 + $0x2f0] sm:$0xff] }
 0x225   :  { %v4405_v39 = vpop.xlane.xlu1 %1348  ;;  %v4407_v45 = vpop.xlane.xlu0 %1401  ;;  %v1595_v15 = vsel %vm162_vm0, %v3083_v35, -inf  ;;  %v1640_v47 = vsel %vm162_vm0, %v3084_v38, -inf }
 0x228   :  { %1611 = vmax.xlane.f32.xlu0 %v1610_v20  ;;  %1566 = vmax.xlane.f32.xlu1 %v1565_v48  ;;  %v3085_v48 = vld [vmem:[%s5194_s0 + $0x288] sm:$0xff] }
 0x229   :  { %v1363_v53 = vpop.xlane.xlu1 %1362  ;;  %v4419_v58 = vpop.xlane.xlu0 %1407 }
 0x22a   :  { %v1877_v33 = vrot.slane %v1363_v53, %v3495_v23  ;;  %v3086_v53 = vld [vmem:[%s5194_s0 + $0x300] sm:$0xff] }
 0x22b   :  { %v1646_v59 = vsel %vm162_vm0, %v3086_v53, -inf }
 0x22c   :  { %v1878_v1 = vsel %vm686_vm1, %v1877_v33, %v1873_v52  ;;  %1617 = vmax.xlane.f32.xlu0 %v1616_v17  ;;  %1572 = vmax.xlane.f32.xlu1 %v1571_v32  ;;  %v1601_v52 = vsel %vm162_vm0, %v3085_v48, -inf  ;;  %v3087_v32 = vld [vmem:[%s5194_s0 + $0x298] sm:$0xff] }
 0x22d   :  { %v1369_v2 = vpop.xlane.xlu1 %1368  ;;  %v4433_v5 = vpop.xlane.xlu0 %1413  ;;  %v1607_v33 = vsel %vm162_vm0, %v3087_v32, -inf }
 0x22e   :  { %v1886_v54 = vrot.slane %v1369_v2, %v3495_v23 }
 0x230   :  { %v1887_v24 = vsel %vm686_vm1, %v1886_v54, %v1882_v0  ;;  %1578 = vmax.xlane.f32.xlu1 %v1577_v49  ;;  %1623 = vmax.xlane.f32.xlu0 %v1622_v7  ;;  %v3088_v0 = vld [vmem:[%s5194_s0 + $0x310] sm:$0xff]  ;;  %v3089_v49 = vld [vmem:[%s5194_s0 + $0x2a8] sm:$0xff]  ;;  %v3090_v7 = vld [vmem:[%s5194_s0 + $0x320] sm:$0xff] }
 0x231   :  { %v2446_v56 = vsel %vm1255_vm2, %v1887_v24, %v1878_v1  ;;  %v1375_v55 = vpop.xlane.xlu1 %1374  ;;  %v4448_v25 = vpop.xlane.xlu0 %1419  ;;  %v1652_v1 = vsel %vm162_vm0, %v3088_v0, -inf  ;;  %v1613_v50 = vsel %vm162_vm0, %v3089_v49, -inf  ;;  %v1658_v54 = vsel %vm162_vm0, %v3090_v7, -inf  ;;  %v3097_v0 = vld [vmem:[%s5194_s0 + $0x2e8] sm:$0xff]  ;;  %v3098_v49 = vld [vmem:[%s5194_s0 + $0x3a0] sm:$0xff] }
 0x232   :  { %v1895_v44 = vrot.slane %v1375_v55, %v3495_v23  ;;  %v3091_v55 = vld [vmem:[%s5194_s0 + $0x2b8] sm:$0xff]  ;;  %v1963_v37 = vrot.slane %v4448_v25, %v3492_v22 }
 0x233   :  { %v1619_v30 = vsel %vm162_vm0, %v3091_v55, -inf  ;;  %v3099_v55 = vld [vmem:[%s5194_s0 + $0x2f8] sm:$0xff] }
 0x234   :  { %v1896_v12 = vsel %vm686_vm1, %v1895_v44, %v1891_v57  ;;  %1584 = vmax.xlane.f32.xlu1 %v1583_v42  ;;  %1629 = vmax.xlane.f32.xlu0 %v1628_v8  ;;  %v1945_v57 = vrot.slane %v4419_v58, %v3492_v22  ;;  %v3092_v42 = vld [vmem:[%s5194_s0 + $0x380] sm:$0xff]  ;;  %v1954_v58 = vrot.slane %v4433_v5, %v3492_v22 }
 0x235   :  { %v2447_v13 = vsel %vm1257_vm3, %v1896_v12, %v2446_v56  ;;  %v1381_v18 = vpop.xlane.xlu1 %1380  ;;  %v4463_v61 = vpop.xlane.xlu0 %1425  ;;  %v1694_v43 = vsel %vm162_vm0, %v3092_v42, -inf  ;;  %v3100_v42 = vld [vmem:[%s5194_s0 + $0x340] sm:$0xff] }
 0x236   :  { %v1904_v27 = vrot.slane %v1381_v18, %v3495_v23 }
 0x238   :  { %v1905_v4 = vsel %vm686_vm1, %v1904_v27, %v1900_v41  ;;  %1590 = vmax.xlane.f32.xlu1 %v1589_v19  ;;  %1635 = vmax.xlane.f32.xlu0 %v1634_v40  ;;  %v1700_v19 = vsel %vm162_vm0, %v3094_v62, -inf }
 0x239   :  { %v4476_v28 = vsel %vm1259_vm4, %v1905_v4, %v2447_v13  ;;  %v4478_v29 = vpop.xlane.xlu1 %1386  ;;  %v4480_v10 = vpop.xlane.xlu0 %1431  ;;  %v3093_v13 = vld [vmem:[%s5194_s0 + $0x2c8] sm:$0xff] }
 0x23a   :  { %v1625_v18 = vsel %vm162_vm0, %v3093_v13, -inf  ;;  %v3102_v13 = vld [vmem:[%s5194_s0 + $0x3b0] sm:$0xff] }
 0x23c   :  { %1596 = vmax.xlane.f32.xlu1 %v1595_v15  ;;  %1641 = vmax.xlane.f32.xlu0 %v1640_v47  ;;  %v3095_v15 = vld [vmem:[%s5194_s0 + $0x2d8] sm:$0xff]  ;;  %v3096_v47 = vld [vmem:[%s5194_s0 + $0x330] sm:$0xff] }
 0x23d   :  { %v4490_v20 = vpop.xlane.xlu1 %1392  ;;  %v4492_v21 = vpop.xlane.xlu0 %1437  ;;  %v1631_v38 = vsel %vm162_vm0, %v3095_v15, -inf  ;;  %v1664_v25 = vsel %vm162_vm0, %v3096_v47, -inf }
 0x240   :  { %1602 = vmax.xlane.f32.xlu1 %v1601_v52  ;;  %1647 = vmax.xlane.f32.xlu0 %v1646_v59  ;;  %v1972_v52 = vrot.slane %v4463_v61, %v3492_v22  ;;  %v1706_v61 = vsel %vm162_vm0, %v3098_v49, -inf }
 0x241   :  { %v4502_v17 = vpop.xlane.xlu1 %1398  ;;  %v4504_v60 = vpop.xlane.xlu0 %1443 }
 0x244   :  { %1608 = vmax.xlane.f32.xlu1 %v1607_v33  ;;  %1653 = vmax.xlane.f32.xlu0 %v1652_v1  ;;  %v1637_v1 = vsel %vm162_vm0, %v3097_v0, -inf  ;;  %v3108_v0 = vld [vmem:[%s5194_s0 + $0x360] sm:$0xff] }
 0x245   :  { %v4514_v2 = vpop.xlane.xlu1 %1404  ;;  %v4516_v6 = vpop.xlane.xlu0 %1449 }
 0x248   :  { %1614 = vmax.xlane.f32.xlu1 %v1613_v50  ;;  %1659 = vmax.xlane.f32.xlu0 %v1658_v54 }
 0x249   :  { %v1411_v24 = vpop.xlane.xlu1 %1410  ;;  %v4528_v56 = vpop.xlane.xlu0 %1455 }
 0x24a   :  { %v1949_v8 = vrot.slane %v1411_v24, %v3495_v23 }
 0x24c   :  { %v1950_v44 = vsel %vm686_vm1, %v1949_v8, %v1945_v57  ;;  %1620 = vmax.xlane.f32.xlu1 %v1619_v30  ;;  %1695 = vmax.xlane.f32.xlu0 %v1694_v43  ;;  %v1643_v30 = vsel %vm162_vm0, %v3099_v55, -inf  ;;  %v1670_v43 = vsel %vm162_vm0, %v3100_v42, -inf  ;;  %v3110_v55 = vld [vmem:[%s5194_s0 + $0x3d0] sm:$0xff] }
 0x24d   :  { %v1417_v41 = vpop.xlane.xlu1 %1416  ;;  %v4542_v12 = vpop.xlane.xlu0 %1461 }
 0x24e   :  { %v1958_v5 = vrot.slane %v1417_v41, %v3495_v23 }
 0x250   :  { %v1959_v40 = vsel %vm686_vm1, %v1958_v5, %v1954_v58  ;;  %1626 = vmax.xlane.f32.xlu1 %v1625_v18  ;;  %1701 = vmax.xlane.f32.xlu0 %v1700_v19  ;;  %v1712_v18 = vsel %vm162_vm0, %v3102_v13, -inf  ;;  %v3103_v5 = vld [vmem:[%s5194_s0 + $0x318] sm:$0xff]  ;;  %v3112_v13 = vld [vmem:[%s5194_s0 + $0x370] sm:$0xff] }
 0x251   :  { %v2453_v27 = vsel %vm1255_vm2, %v1959_v40, %v1950_v44  ;;  %v1423_v4 = vpop.xlane.xlu1 %1422  ;;  %v4557_v35 = vpop.xlane.xlu0 %1467  ;;  %v3101_v44 = vld [vmem:[%s5194_s0 + $0x308] sm:$0xff]  ;;  %v3104_v40 = vld [vmem:[%s5194_s0 + $0x350] sm:$0xff] }
 0x252   :  { %v1967_v48 = vrot.slane %v1423_v4, %v3495_v23  ;;  %v1649_v41 = vsel %vm162_vm0, %v3101_v44, -inf  ;;  %v3111_v44 = vld [vmem:[%s5194_s0 + $0x338] sm:$0xff] }
 0x254   :  { %v1968_v53 = vsel %vm686_vm1, %v1967_v48, %v1963_v37  ;;  %1632 = vmax.xlane.f32.xlu1 %v1631_v38  ;;  %1665 = vmax.xlane.f32.xlu0 %v1664_v25  ;;  %v1655_v37 = vsel %vm162_vm0, %v3103_v5, -inf  ;;  %v3105_v38 = vld [vmem:[%s5194_s0 + $0x328] sm:$0xff]  ;;  %v3106_v25 = vld [vmem:[%s5194_s0 + $0x3c0] sm:$0xff]  ;;  %v1909_v5 = vrot.slane %v4371_v36, %v3492_v22  ;;  %v1936_v36 = vrot.slane %v4407_v45, %v3492_v22 }
 0x255   :  { %v2454_v59 = vsel %vm1257_vm3, %v1968_v53, %v2453_v27  ;;  %v1429_v32 = vpop.xlane.xlu1 %1428  ;;  %v4572_v33 = vpop.xlane.xlu0 %1473  ;;  %v1676_v27 = vsel %vm162_vm0, %v3104_v40, -inf  ;;  %v1661_v47 = vsel %vm162_vm0, %v3105_v38, -inf  ;;  %v1718_v48 = vsel %vm162_vm0, %v3106_v25, -inf }
 0x256   :  { %v1976_v50 = vrot.slane %v1429_v32, %v3495_v23  ;;  %v1918_v40 = vrot.slane %v4383_v3, %v3492_v22  ;;  %v1927_v38 = vrot.slane %v4395_v34, %v3492_v22  ;;  %v3113_v3 = vld [vmem:[%s5194_s0 + $0x3a8] sm:$0xff] }
 0x257   :  { %v1709_v34 = vsel %vm162_vm0, %v3113_v3, -inf }
 0x258   :  { %v1977_v7 = vsel %vm686_vm1, %v1976_v50, %v1972_v52  ;;  %1638 = vmax.xlane.f32.xlu1 %v1637_v1  ;;  %1707 = vmax.xlane.f32.xlu0 %v1706_v61  ;;  %v1682_v1 = vsel %vm162_vm0, %v3108_v0, -inf  ;;  %v3109_v50 = vld [vmem:[%s5194_s0 + $0x398] sm:$0xff] }
 0x259   :  { %v4585_v54 = vsel %vm1259_vm4, %v1977_v7, %v2454_v59  ;;  %v4587_v57 = vpop.xlane.xlu1 %1434  ;;  %v4589_v24 = vpop.xlane.xlu0 %1479  ;;  %v3107_v59 = vld [vmem:[%s5194_s0 + $0x388] sm:$0xff]  ;;  %v1703_v7 = vsel %vm162_vm0, %v3109_v50, -inf }
 0x25a   :  { %v1697_v32 = vsel %vm162_vm0, %v3107_v59, -inf  ;;  %v3115_v50 = vld [vmem:[%s5194_s0 + $0x348] sm:$0xff] }
 0x25c   :  { %1644 = vmax.xlane.f32.xlu1 %v1643_v30  ;;  %1671 = vmax.xlane.f32.xlu0 %v1670_v43  ;;  %v1724_v30 = vsel %vm162_vm0, %v3110_v55, -inf  ;;  %v3116_v55 = vld [vmem:[%s5194_s0 + $0x3f0] sm:$0xff] }
 0x25d   :  { %v4599_v8 = vpop.xlane.xlu1 %1440  ;;  %v4601_v58 = vpop.xlane.xlu0 %1485 }
 0x260   :  { %1650 = vmax.xlane.f32.xlu1 %v1649_v41  ;;  %1713 = vmax.xlane.f32.xlu0 %v1712_v18  ;;  %v1667_v41 = vsel %vm162_vm0, %v3111_v44, -inf  ;;  %v1688_v18 = vsel %vm162_vm0, %v3112_v13, -inf  ;;  %v2026_v13 = vrot.slane %v4542_v12, %v3492_v22  ;;  %v3117_v12 = vld [vmem:[%s5194_s0 + $0x3b8] sm:$0xff] }
 0x261   :  { %v4611_v62 = vpop.xlane.xlu1 %1446  ;;  %v4613_v19 = vpop.xlane.xlu0 %1491 }
 0x264   :  { %1656 = vmax.xlane.f32.xlu1 %v1655_v37  ;;  %1677 = vmax.xlane.f32.xlu0 %v1676_v27  ;;  %v1913_v37 = vrot.slane %v4478_v29, %v3495_v23  ;;  %v1922_v27 = vrot.slane %v4490_v20, %v3495_v23  ;;  %v1940_v29 = vrot.slane %v4514_v2, %v3495_v23  ;;  %v3114_v20 = vld [vmem:[%s5194_s0 + $0x3e0] sm:$0xff] }
 0x265   :  { %v4623_v4 = vpop.xlane.xlu1 %1452  ;;  %v4625_v15 = vpop.xlane.xlu0 %1497 }
 0x266   :  { %v1914_v45 = vsel %vm686_vm1, %v1913_v37, %v1909_v5  ;;  %v1923_v59 = vsel %vm686_vm1, %v1922_v27, %v1918_v40  ;;  %v1941_v44 = vsel %vm686_vm1, %v1940_v29, %v1936_v36  ;;  %v2035_v37 = vrot.slane %v4557_v35, %v3492_v22 }
 0x267   :  { %v2044_v36 = vrot.slane %v4572_v33, %v3492_v22  ;;  %v2053_v29 = vrot.slane %v4589_v24, %v3492_v22  ;;  %v2071_v33 = vrot.slane %v4613_v19, %v3492_v22 }
 0x268   :  { %1662 = vmax.xlane.f32.xlu1 %v1661_v47  ;;  %1719 = vmax.xlane.f32.xlu0 %v1718_v48  ;;  %v1931_v47 = vrot.slane %v4502_v17, %v3495_v23  ;;  %v1730_v17 = vsel %vm162_vm0, %v3114_v20, -inf  ;;  %v2062_v20 = vrot.slane %v4601_v58, %v3492_v22 }
 0x269   :  { %v4635_v52 = vpop.xlane.xlu1 %1458  ;;  %v4637_v53 = vpop.xlane.xlu0 %1503 }
 0x26a   :  { %v1932_v2 = vsel %vm686_vm1, %v1931_v47, %v1927_v38  ;;  %v1715_v47 = vsel %vm162_vm0, %v3117_v12, -inf  ;;  %v2021_v35 = vrot.slane %v4635_v52, %v3495_v23 }
 0x26c   :  { %1698 = vmax.xlane.f32.xlu1 %v1697_v32  ;;  %1683 = vmax.xlane.f32.xlu0 %v1682_v1  ;;  %v2449_v32 = vsel %vm1261_vm5, %v1914_v45, %v4476_v28  ;;  %v3118_v45 = vld [vmem:[%s5194_s0 + $0x358] sm:$0xff] }
 0x26d   :  { %v4647_v49 = vpop.xlane.xlu1 %1464  ;;  %v4649_v61 = vpop.xlane.xlu0 %1509  ;;  %v1679_v58 = vsel %vm162_vm0, %v3118_v45, -inf  ;;  %v1985_v45 = vrot.slane %v4587_v57, %v3495_v23 }
 0x270   :  { %1704 = vmax.xlane.f32.xlu1 %v1703_v7  ;;  %1725 = vmax.xlane.f32.xlu0 %v1724_v30  ;;  %v1673_v7 = vsel %vm162_vm0, %v3115_v50, -inf  ;;  %v1736_v30 = vsel %vm162_vm0, %v3116_v55, -inf  ;;  %v2080_v50 = vrot.slane %v4625_v15, %v3492_v22 }
 0x271   :  { %v4659_v42 = vpop.xlane.xlu1 %1470  ;;  %v4661_v43 = vpop.xlane.xlu0 %1515 }
 0x272   :  { %v2039_v40 = vrot.slane %v4659_v42, %v3495_v23 }
 0x274   :  { %1668 = vmax.xlane.f32.xlu1 %v1667_v41  ;;  %1689 = vmax.xlane.f32.xlu0 %v1688_v18  ;;  %v2450_v41 = vsel %vm1263_vm6, %v1923_v59, %v2449_v32  ;;  %v2030_v18 = vrot.slane %v4647_v49, %v3495_v23  ;;  %v2017_v49 = vrot.slane %v4528_v56, %v3492_v22 }
 0x275   :  { %v1477_v25 = vpop.xlane.xlu1 %1476  ;;  %v4687_v48 = vpop.xlane.xlu0 %1521  ;;  %v2451_v28 = vsel %vm1265_vm7, %v1932_v2, %v2450_v41  ;;  %v2040_v52 = vsel %vm686_vm1, %v2039_v40, %v2035_v37 }
 0x276   :  { %v2452_v5 = vsel %vm1267_vm8, %v1941_v44, %v2451_v28  ;;  %v2048_v42 = vrot.slane %v1477_v25, %v3495_v23  ;;  %v2031_v56 = vsel %vm686_vm1, %v2030_v18, %v2026_v13  ;;  %v2022_v59 = vsel %vm686_vm1, %v2021_v35, %v2017_v49  ;;  %v3119_v13 = vld [vmem:[%s5194_s0 + $0x3c8] sm:$0xff] }
 0x277   :  { %v1721_v18 = vsel %vm162_vm0, %v3119_v13, -inf }
 0x278   :  { %1710 = vmax.xlane.f32.xlu1 %v1709_v34  ;;  %1731 = vmax.xlane.f32.xlu0 %v1730_v17  ;;  %v2510_v34 = vsel %vm162_vm0, %v2452_v5, -inf  ;;  %v2049_v2 = vsel %vm686_vm1, %v2048_v42, %v2044_v36  ;;  %v3120_v36 = vld [vmem:[%s5194_s0 + $0x368] sm:$0xff] }
 0x279   :  { %v1483_v0 = vpop.xlane.xlu1 %1482  ;;  %v4702_v1 = vpop.xlane.xlu0 %1527  ;;  %v1685_v35 = vsel %vm162_vm0, %v3120_v36, -inf  ;;  %v2116_v36 = vrot.slane %v4687_v48, %v3492_v22 }
 0x27a   :  { %v2057_v3 = vrot.slane %v1483_v0, %v3495_v23  ;;  %v2460_v0 = vsel %vm1255_vm2, %v2031_v56, %v2022_v59  ;;  %v1994_v59 = vrot.slane %v4599_v8, %v3495_v23 }
 0x27c   :  { %1674 = vmax.xlane.f32.xlu1 %v1673_v7  ;;  %1737 = vmax.xlane.f32.xlu0 %v1736_v30  ;;  %v2058_v19 = vsel %vm686_vm1, %v2057_v3, %v2053_v29  ;;  %v2461_v7 = vsel %vm1257_vm3, %v2040_v52, %v2460_v0  ;;  %v2008_v0 = vrot.slane %v4516_v6, %v3492_v22 }
 0x27d   :  { %v1489_v27 = vpop.xlane.xlu1 %1488  ;;  %v4724_v38 = vpop.xlane.xlu0 %1533  ;;  %v2462_v30 = vsel %vm1259_vm4, %v2049_v2, %v2461_v7  ;;  %v1999_v2 = vrot.slane %v4504_v60, %v3492_v22 }
 0x27e   :  { %v2066_v17 = vrot.slane %v1489_v27, %v3495_v23  ;;  %v2463_v15 = vsel %vm1261_vm5, %v2058_v19, %v2462_v30 }
 0x280   :  { %1716 = vmax.xlane.f32.xlu1 %v1715_v47  ;;  %2511 = vmax.xlane.f32.xlu0 %v2510_v34  ;;  %v2067_v55 = vsel %vm686_vm1, %v2066_v17, %v2062_v20  ;;  %v3121_v34 = vld [vmem:[%s5194_s0 + $0x3d8] sm:$0xff] }
 0x281   :  { %v1495_v25 = vpop.xlane.xlu1 %1494  ;;  %v4748_v24 = vpop.xlane.xlu0 %1539  ;;  %v2464_v37 = vsel %vm1263_vm6, %v2067_v55, %v2463_v15  ;;  %v1727_v20 = vsel %vm162_vm0, %v3121_v34, -inf  ;;  %v3124_v55 = vld [vmem:[%s5194_s0 + $0x3f8] sm:$0xff]  ;;  %v2134_v34 = vrot.slane %v4724_v38, %v3492_v22 }
 0x282   :  { %v2075_v32 = vrot.slane %v1495_v25, %v3495_v23  ;;  %v1981_v25 = vrot.slane %v4480_v10, %v3492_v22  ;;  %v2012_v10 = vrot.slane %v4623_v4, %v3495_v23  ;;  %v1739_v30 = vsel %vm162_vm0, %v3124_v55, -inf }
 0x283   :  { %v2143_v48 = vrot.slane %v4748_v24, %v3492_v22 }
 0x284   :  { %1680 = vmax.xlane.f32.xlu1 %v1679_v58  ;;  %v2076_v44 = vsel %vm686_vm1, %v2075_v32, %v2071_v33  ;;  %v3122_v33 = vld [vmem:[%s5194_s0 + $0x378] sm:$0xff]  ;;  %v1990_v58 = vrot.slane %v4492_v21, %v3492_v22  ;;  %v2003_v32 = vrot.slane %v4611_v62, %v3495_v23  ;;  %v3123_v21 = vld [vmem:[%s5194_s0 + $0x3e8] sm:$0xff]  ;;  %v1986_v60 = vsel %vm686_vm1, %v1985_v45, %v1981_v25 }
 0x285   :  { %v1501_v41 = vpop.xlane.xlu1 %1500  ;;  %v4765_v28 = vpop.xlane.xlu0 %1545  ;;  %v2465_v27 = vsel %vm1265_vm7, %v2076_v44, %v2464_v37  ;;  %v1691_v52 = vsel %vm162_vm0, %v3122_v33, -inf  ;;  %v1733_v8 = vsel %vm162_vm0, %v3123_v21, -inf  ;;  %v2456_v6 = vsel %vm1261_vm5, %v1986_v60, %v4585_v54 }
 0x286   :  { %v2084_v5 = vrot.slane %v1501_v41, %v3495_v23  ;;  %v1995_v62 = vsel %vm686_vm1, %v1994_v59, %v1990_v58  ;;  %v2013_v44 = vsel %vm686_vm1, %v2012_v10, %v2008_v0  ;;  %v2152_v58 = vrot.slane %v4765_v28, %v3492_v22 }
 0x287   :  { %v2457_v41 = vsel %vm1263_vm6, %v1995_v62, %v2456_v6 }
 0x288   :  { %1722 = vmax.xlane.f32.xlu1 %v1721_v18  ;;  %v2085_v40 = vsel %vm686_vm1, %v2084_v5, %v2080_v50  ;;  %v2004_v50 = vsel %vm686_vm1, %v2003_v32, %v1999_v2  ;;  %v2098_v18 = vrot.slane %v4649_v61, %v3492_v22  ;;  %v2107_v5 = vrot.slane %v4661_v43, %v3492_v22 }
 0x289   :  { %v4776_v12 = vpop.xlane.xlu1 %1506  ;;  %v4778_v47 = vpop.xlane.xlu0 %1551  ;;  %v2466_v49 = vsel %vm1267_vm8, %v2085_v40, %v2465_v27  ;;  %v2458_v13 = vsel %vm1265_vm7, %v2004_v50, %v2457_v41 }
 0x28a   :  { %v2516_v42 = vsel %vm162_vm0, %v2466_v49, -inf  ;;  %v2459_v15 = vsel %vm1267_vm8, %v2013_v44, %v2458_v13  ;;  %v2089_v49 = vrot.slane %v4637_v53, %v3492_v22  ;;  %v2093_v61 = vrot.slane %v4776_v12, %v3495_v23 }
 0x28b   :  { %2517 = vmax.xlane.f32.xlu0 %v2516_v42  ;;  %v2125_v42 = vrot.slane %v4702_v1, %v3492_v22 }
 0x28c   :  { %1686 = vmax.xlane.f32.xlu1 %v1685_v35  ;;  %v2094_v1 = vsel %vm686_vm1, %v2093_v61, %v2089_v49 }
 0x28d   :  { %v1513_v29 = vpop.xlane.xlu1 %1512  ;;  %v4786_v3 = vpop.xlane.xlu0 %1557 }
 0x28e   :  { %v2102_v54 = vrot.slane %v1513_v29, %v3495_v23  ;;  %v2513_v29 = vsel %vm162_vm0, %v2459_v15, -inf }
 0x290   :  { %1728 = vmax.xlane.f32.xlu1 %v1727_v20  ;;  %v2103_v53 = vsel %vm686_vm1, %v2102_v54, %v2098_v18 }
 0x291   :  { %v1519_v56 = vpop.xlane.xlu1 %1518  ;;  %v4792_v17 = vpop.xlane.xlu0 %1563  ;;  %v2467_v38 = vsel %vm1255_vm2, %v2103_v53, %v2094_v1 }
 0x292   :  { %v2111_v37 = vrot.slane %v1519_v56, %v3495_v23 }
 0x294   :  { %1692 = vmax.xlane.f32.xlu1 %v1691_v52  ;;  %v2112_v12 = vsel %vm686_vm1, %v2111_v37, %v2107_v5  ;;  %v2170_v5 = vrot.slane %v4786_v3, %v3492_v22 }
 0x295   :  { %v1525_v57 = vpop.xlane.xlu1 %1524  ;;  %v4814_v19 = vpop.xlane.xlu0 %1569  ;;  %v2468_v59 = vsel %vm1257_vm3, %v2112_v12, %v2467_v38 }
 0x296   :  { %v2120_v35 = vrot.slane %v1525_v57, %v3495_v23 }
 0x298   :  { %1734 = vmax.xlane.f32.xlu1 %v1733_v8  ;;  %v2121_v52 = vsel %vm686_vm1, %v2120_v35, %v2116_v36  ;;  %v2161_v35 = vrot.slane %v4778_v47, %v3492_v22 }
 0x299   :  { %v1531_v4 = vpop.xlane.xlu1 %1530  ;;  %v4825_v7 = vpop.xlane.xlu0 %1575  ;;  %v2469_v2 = vsel %vm1259_vm4, %v2121_v52, %v2468_v59 }
 0x29a   :  { %v2129_v43 = vrot.slane %v1531_v4, %v3495_v23 }
 0x29c   :  { %1740 = vmax.xlane.f32.xlu1 %v1739_v30  ;;  %v2130_v45 = vsel %vm686_vm1, %v2129_v43, %v2125_v42  ;;  %v2188_v42 = vrot.slane %v4814_v19, %v3492_v22 }
 0x29d   :  { %v1537_v40 = vpop.xlane.xlu1 %1536  ;;  %v4841_v27 = vpop.xlane.xlu0 %1581  ;;  %v2470_v57 = vsel %vm1261_vm5, %v2130_v45, %v2469_v2 }
 0x29e   :  { %v2138_v20 = vrot.slane %v1537_v40, %v3495_v23  ;;  %v2179_v40 = vrot.slane %v4792_v17, %v3492_v22 }
 0x2a0   :  { %2514 = vmax.xlane.f32.xlu1 %v2513_v29  ;;  %v2139_v24 = vsel %vm686_vm1, %v2138_v20, %v2134_v34  ;;  %v2197_v29 = vrot.slane %v4825_v7, %v3492_v22  ;;  %v2206_v34 = vrot.slane %v4841_v27, %v3492_v22 }
 0x2a1   :  { %v1543_v56 = vpop.xlane.xlu1 %1542  ;;  %v1588_v33 = vpop.xlane.xlu0 %1587  ;;  %v2471_v8 = vsel %vm1263_vm6, %v2139_v24, %v2470_v57 }
 0x2a2   :  { %v2147_v25 = vrot.slane %v1543_v56, %v3495_v23  ;;  %v2215_v47 = vrot.slane %v1588_v33, %v3492_v22 }
 0x2a4   :  { %v2148_v32 = vsel %vm686_vm1, %v2147_v25, %v2143_v48 }
 0x2a5   :  { %v1549_v0 = vpop.xlane.xlu1 %1548  ;;  %v1594_v10 = vpop.xlane.xlu0 %1593  ;;  %v2472_v28 = vsel %vm1265_vm7, %v2148_v32, %v2471_v8 }
 0x2a6   :  { %v2156_v21 = vrot.slane %v1549_v0, %v3495_v23  ;;  %v2224_v25 = vrot.slane %v1594_v10, %v3492_v22 }
 0x2a8   :  { %v2157_v60 = vsel %vm686_vm1, %v2156_v21, %v2152_v58 }
 0x2a9   :  { %v1555_v62 = vpop.xlane.xlu1 %1554  ;;  %v4877_v50 = vpop.xlane.xlu0 %1599  ;;  %v2473_v6 = vsel %vm1267_vm8, %v2157_v60, %v2472_v28 }
 0x2aa   :  { %v2519_v4 = vsel %vm162_vm0, %v2473_v6, -inf  ;;  %v2165_v43 = vrot.slane %v1555_v62, %v3495_v23 }
 0x2ab   :  { %2520 = vmax.xlane.f32.xlu1 %v2519_v4 }
 0x2ac   :  { %v2166_v56 = vsel %vm686_vm1, %v2165_v43, %v2161_v35  ;;  %v2233_v35 = vrot.slane %v4877_v50, %v3492_v22 }
 0x2ad   :  { %v1561_v55 = vpop.xlane.xlu1 %1560  ;;  %v4881_v30 = vpop.xlane.xlu0 %1605 }
 0x2ae   :  { %v2174_v37 = vrot.slane %v1561_v55, %v3495_v23 }
 0x2b0   :  { %v2175_v53 = vsel %vm686_vm1, %v2174_v37, %v2170_v5  ;;  %v2242_v5 = vrot.slane %v4881_v30, %v3492_v22 }
 0x2b1   :  { %v1567_v44 = vpop.xlane.xlu1 %1566  ;;  %v4883_v41 = vpop.xlane.xlu0 %1611  ;;  %v2474_v52 = vsel %vm1255_vm2, %v2175_v53, %v2166_v56 }
 0x2b2   :  { %v2183_v49 = vrot.slane %v1567_v44, %v3495_v23 }
 0x2b4   :  { %v2184_v19 = vsel %vm686_vm1, %v2183_v49, %v2179_v40  ;;  %v2251_v40 = vrot.slane %v4883_v41, %v3492_v22 }
 0x2b5   :  { %v1573_v13 = vpop.xlane.xlu1 %1572  ;;  %v4885_v18 = vpop.xlane.xlu0 %1617  ;;  %v2475_v38 = vsel %vm1257_vm3, %v2184_v19, %v2474_v52 }
 0x2b6   :  { %v2192_v3 = vrot.slane %v1573_v13, %v3495_v23 }
 0x2b8   :  { %v2193_v1 = vsel %vm686_vm1, %v2192_v3, %v2188_v42  ;;  %v2260_v42 = vrot.slane %v4885_v18, %v3492_v22 }
 0x2b9   :  { %v1579_v54 = vpop.xlane.xlu1 %1578  ;;  %v4887_v15 = vpop.xlane.xlu0 %1623  ;;  %v2476_v45 = vsel %vm1259_vm4, %v2193_v1, %v2475_v38 }
 0x2ba   :  { %v2201_v17 = vrot.slane %v1579_v54, %v3495_v23  ;;  %v2269_v30 = vrot.slane %v4887_v15, %v3492_v22 }
 0x2bc   :  { %v2202_v27 = vsel %vm686_vm1, %v2201_v17, %v2197_v29 }
 0x2bd   :  { %v1585_v36 = vpop.xlane.xlu1 %1584  ;;  %v4895_v61 = vpop.xlane.xlu0 %1629  ;;  %v2477_v2 = vsel %vm1261_vm5, %v2202_v27, %v2476_v45 }
 0x2be   :  { %v2210_v20 = vrot.slane %v1585_v36, %v3495_v23  ;;  %v2278_v41 = vrot.slane %v4895_v61, %v3492_v22 }
 0x2c0   :  { %v2211_v33 = vsel %vm686_vm1, %v2210_v20, %v2206_v34 }
 0x2c1   :  { %v1591_v48 = vpop.xlane.xlu1 %1590  ;;  %v1636_v12 = vpop.xlane.xlu0 %1635  ;;  %v2478_v0 = vsel %vm1263_vm6, %v2211_v33, %v2477_v2 }
 0x2c2   :  { %v2219_v7 = vrot.slane %v1591_v48, %v3495_v23  ;;  %v2287_v50 = vrot.slane %v1636_v12, %v3492_v22 }
 0x2c4   :  { %v2220_v58 = vsel %vm686_vm1, %v2219_v7, %v2215_v47 }
 0x2c5   :  { %v1597_v59 = vpop.xlane.xlu1 %1596  ;;  %v1642_v24 = vpop.xlane.xlu0 %1641  ;;  %v2479_v10 = vsel %vm1265_vm7, %v2220_v58, %v2478_v0 }
 0x2c6   :  { %v2228_v32 = vrot.slane %v1597_v59, %v3495_v23  ;;  %v2296_v56 = vrot.slane %v1642_v24, %v3492_v22 }
 0x2c8   :  { %v2229_v57 = vsel %vm686_vm1, %v2228_v32, %v2224_v25 }
 0x2c9   :  { %v1603_v21 = vpop.xlane.xlu1 %1602  ;;  %v4927_v8 = vpop.xlane.xlu0 %1647  ;;  %v2480_v60 = vsel %vm1267_vm8, %v2229_v57, %v2479_v10 }
 0x2ca   :  { %v2522_v28 = vsel %vm162_vm0, %v2480_v60, -inf  ;;  %v2237_v43 = vrot.slane %v1603_v21, %v3495_v23 }
 0x2cb   :  { %2523 = vmax.xlane.f32.xlu0 %v2522_v28 }
 0x2cc   :  { %v2238_v47 = vsel %vm686_vm1, %v2237_v43, %v2233_v35 }
 0x2cd   :  { %v1609_v62 = vpop.xlane.xlu1 %1608  ;;  %v4931_v6 = vpop.xlane.xlu0 %1653 }
 0x2ce   :  { %v2246_v37 = vrot.slane %v1609_v62, %v3495_v23  ;;  %v2314_v43 = vrot.slane %v4931_v6, %v3492_v22 }
 0x2d0   :  { %v2247_v17 = vsel %vm686_vm1, %v2246_v37, %v2242_v5 }
 0x2d1   :  { %v1615_v4 = vpop.xlane.xlu1 %1614  ;;  %v4933_v55 = vpop.xlane.xlu0 %1659  ;;  %v2481_v48 = vsel %vm1255_vm2, %v2247_v17, %v2238_v47  ;;  %v2305_v17 = vrot.slane %v4927_v8, %v3492_v22 }
 0x2d2   :  { %v2255_v49 = vrot.slane %v1615_v4, %v3495_v23 }
 0x2d4   :  { %v2256_v18 = vsel %vm686_vm1, %v2255_v49, %v2251_v40 }
 0x2d5   :  { %v1621_v44 = vpop.xlane.xlu1 %1620  ;;  %v4935_v54 = vpop.xlane.xlu0 %1695  ;;  %v2482_v1 = vsel %vm1257_vm3, %v2256_v18, %v2481_v48 }
 0x2d6   :  { %v2264_v3 = vrot.slane %v1621_v44, %v3495_v23 }
 0x2d8   :  { %v2265_v15 = vsel %vm686_vm1, %v2264_v3, %v2260_v42 }
 0x2d9   :  { %v1627_v13 = vpop.xlane.xlu1 %1626  ;;  %v4958_v53 = vpop.xlane.xlu0 %1701  ;;  %v2483_v7 = vsel %vm1259_vm4, %v2265_v15, %v2482_v1  ;;  %v2377_v1 = vrot.slane %v4935_v54, %v3492_v22 }
 0x2da   :  { %v2273_v29 = vrot.slane %v1627_v13, %v3495_v23 }
 0x2dc   :  { %v2274_v61 = vsel %vm686_vm1, %v2273_v29, %v2269_v30  ;;  %v2323_v30 = vrot.slane %v4933_v55, %v3492_v22 }
 0x2dd   :  { %v1633_v36 = vpop.xlane.xlu1 %1632  ;;  %v2484_v25 = vsel %vm1261_vm5, %v2274_v61, %v2483_v7  ;;  %v1666_v33 = vpop.xlane.xlu0 %1665 }
 0x2de   :  { %v2282_v34 = vrot.slane %v1633_v36, %v3495_v23 }
 0x2e0   :  { %v2283_v12 = vsel %vm686_vm1, %v2282_v34, %v2278_v41  ;;  %v2332_v34 = vrot.slane %v1666_v33, %v3492_v22 }
 0x2e1   :  { %v1639_v20 = vpop.xlane.xlu1 %1638  ;;  %v2485_v45 = vsel %vm1263_vm6, %v2283_v12, %v2484_v25  ;;  %v4977_v0 = vpop.xlane.xlu0 %1707 }
 0x2e2   :  { %v2291_v19 = vrot.slane %v1639_v20, %v3495_v23 }
 0x2e4   :  { %v2292_v52 = vsel %vm686_vm1, %v2291_v19, %v2287_v50 }
 0x2e5   :  { %v1645_v27 = vpop.xlane.xlu1 %1644  ;;  %v2486_v59 = vsel %vm1265_vm7, %v2292_v52, %v2485_v45  ;;  %v1672_v21 = vpop.xlane.xlu0 %1671  ;;  %v2386_v52 = vrot.slane %v4958_v53, %v3492_v22 }
 0x2e6   :  { %v2300_v38 = vrot.slane %v1645_v27, %v3495_v23  ;;  %v2341_v20 = vrot.slane %v1672_v21, %v3492_v22  ;;  %v2395_v27 = vrot.slane %v4977_v0, %v3492_v22 }
 0x2e8   :  { %v2301_v58 = vsel %vm686_vm1, %v2300_v38, %v2296_v56 }
 0x2e9   :  { %v1651_v24 = vpop.xlane.xlu1 %1650  ;;  %v2487_v2 = vsel %vm1267_vm8, %v2301_v58, %v2486_v59  ;;  %v4981_v28 = vpop.xlane.xlu0 %1713 }
 0x2ea   :  { %v2525_v32 = vsel %vm162_vm0, %v2487_v2, -inf  ;;  %v2309_v50 = vrot.slane %v1651_v24, %v3495_v23  ;;  %v2404_v59 = vrot.slane %v4981_v28, %v3492_v22 }
 0x2eb   :  { %2526 = vmax.xlane.f32.xlu1 %v2525_v32 }
 0x2ec   :  { %v2310_v12 = vsel %vm686_vm1, %v2309_v50, %v2305_v17 }
 0x2ed   :  { %v1657_v57 = vpop.xlane.xlu1 %1656  ;;  %v1678_v44 = vpop.xlane.xlu0 %1677 }
 0x2ee   :  { %v2318_v3 = vrot.slane %v1657_v57, %v3495_v23  ;;  %v2350_v55 = vrot.slane %v1678_v44, %v3492_v22 }
 0x2f0   :  { %v2319_v15 = vsel %vm686_vm1, %v2318_v3, %v2314_v43 }
 0x2f1   :  { %v1663_v10 = vpop.xlane.xlu1 %1662  ;;  %v4983_v5 = vpop.xlane.xlu0 %1719  ;;  %v2488_v25 = vsel %vm1255_vm2, %v2319_v15, %v2310_v12  ;;  %v3162_v12 = vmov 0  }
 0x2f2   :  { %v2327_v29 = vrot.slane %v1663_v10, %v3495_v23  ;;  %v2413_v28 = vrot.slane %v4983_v5, %v3492_v22  ;;  %2991 = vset.pattern.permute.xlu0 %v3162_v12  ;;  %2992 = vset.pattern.permute.xlu1 %v3162_v12 }
 0x2f4   :  { %v2328_v48 = vsel %vm686_vm1, %v2327_v29, %v2323_v30 }
 0x2f5   :  { %v4979_v60 = vpop.xlane.xlu1 %1698  ;;  %v1684_v49 = vpop.xlane.xlu0 %1683  ;;  %v2489_v33 = vsel %vm1257_vm3, %v2328_v48, %v2488_v25 }
 0x2f6   :  { %v2359_v8 = vrot.slane %v1684_v49, %v3492_v22  ;;  %v2381_v57 = vrot.slane %v4979_v60, %v3495_v23 }
 0x2f9   :  { %v1705_v62 = vpop.xlane.xlu1 %1704  ;;  %v4985_v35 = vpop.xlane.xlu0 %1725 }
 0x2fa   :  { %v2390_v45 = vrot.slane %v1705_v62, %v3495_v23 }
 0x2fd   :  { %v1669_v4 = vpop.xlane.xlu1 %1668  ;;  %v1690_v6 = vpop.xlane.xlu0 %1689 }
 0x2fe   :  { %v2336_v18 = vrot.slane %v1669_v4, %v3495_v23  ;;  %v2368_v54 = vrot.slane %v1690_v6, %v3492_v22  ;;  %v2422_v4 = vrot.slane %v4985_v35, %v3492_v22  ;;  %v2382_v35 = vsel %vm686_vm1, %v2381_v57, %v2377_v1 }
 0x300   :  { %v2337_v7 = vsel %vm686_vm1, %v2336_v18, %v2332_v34 }
 0x301   :  { %v1711_v13 = vpop.xlane.xlu1 %1710  ;;  %v2490_v53 = vsel %vm1259_vm4, %v2337_v7, %v2489_v33  ;;  %v1732_v2 = vpop.xlane.xlu0 %1731  ;;  %v2983_v7 = vld [vmem:[%s5195_s1] ss:$0 sm:$0xff] }
 0x302   :  { %v2399_v24 = vrot.slane %v1711_v13, %v3495_v23  ;;  %v2431_v43 = vrot.slane %v1732_v2, %v3492_v22 }
 0x305   :  { %v1675_v37 = vpop.xlane.xlu1 %1674  ;;  %v1738_v17 = vpop.xlane.xlu0 %1737 }
 0x306   :  { %v2345_v47 = vrot.slane %v1675_v37, %v3495_v23  ;;  %v2391_v37 = vsel %vm686_vm1, %v2390_v45, %v2386_v52  ;;  %v2440_v18 = vrot.slane %v1738_v17, %v3492_v22  ;;  %v2985_v52 = vld [vmem:[%s5195_s1 + $0x1] ss:$0 sm:$0xff]  ;;  %s2655_s1 = sld [smem:[#allocation2]] }
 0x308   :  { %v2346_v38 = vsel %vm686_vm1, %v2345_v47, %v2341_v20 }
 0x309   :  { %v1717_v40 = vpop.xlane.xlu1 %1716  ;;  %v2491_v10 = vsel %vm1261_vm5, %v2346_v38, %v2490_v53 }
 0x30a   :  { %v2408_v21 = vrot.slane %v1717_v40, %v3495_v23 }
 0x30d   :  { %v1681_v36 = vpop.xlane.xlu1 %1680 }
 0x30e   :  { %v2354_v19 = vrot.slane %v1681_v36, %v3495_v23  ;;  %v2400_v36 = vsel %vm686_vm1, %v2399_v24, %v2395_v27  ;;  %v2512_v27 = vpop.xlane.xlu0 %2511 }
 0x310   :  { %v2355_v58 = vsel %vm686_vm1, %v2354_v19, %v2350_v55 }
 0x311   :  { %v1723_v42 = vpop.xlane.xlu1 %1722  ;;  %v2492_v13 = vsel %vm1263_vm6, %v2355_v58, %v2491_v10  ;;  %v1350_v58 = vmul.f32 0.00390625, %v4289_v46  ;;  %v1352_v10 = vmul.f32 0.00390625, %v4299_v51 }
 0x312   :  { %v2417_v44 = vrot.slane %v1723_v42, %v3495_v23  ;;  %v2409_v42 = vsel %vm686_vm1, %v2408_v21, %v2404_v59 }
 0x314   :  { %v2418_v34 = vsel %vm686_vm1, %v2417_v44, %v2413_v28  ;;  %v5067_v25 = vpop.xlane.xlu0 %2517  ;;  %v1353_v28 = vmul.f32 0.00390625, %v4381_v26 }
 0x315   :  { %v1687_v41 = vpop.xlane.xlu1 %1686 }
 0x316   :  { %v2363_v61 = vrot.slane %v1687_v41, %v3495_v23  ;;  %v2495_v41 = vsel %vm1255_vm2, %v2391_v37, %v2382_v35  ;;  %v1355_v37 = vmul.f32 0.00390625, %v4393_v9 }
 0x317   :  { %v2496_v50 = vsel %vm1257_vm3, %v2400_v36, %v2495_v41 }
 0x318   :  { %v2364_v32 = vsel %vm686_vm1, %v2363_v61, %v2359_v8  ;;  %v2497_v6 = vsel %vm1259_vm4, %v2409_v42, %v2496_v50 }
 0x319   :  { %v1729_v56 = vpop.xlane.xlu1 %1728  ;;  %v2493_v40 = vsel %vm1265_vm7, %v2364_v32, %v2492_v13  ;;  %v2498_v55 = vsel %vm1261_vm5, %v2418_v34, %v2497_v6  ;;  %v1351_v32 = vmul.f32 0.00390625, %v4369_v31 }
 0x31a   :  { %v2426_v60 = vrot.slane %v1729_v56, %v3495_v23 }
 0x31c   :  { %v2427_v20 = vsel %vm686_vm1, %v2426_v60, %v2422_v4  ;;  %v1354_v4 = vmul.f32 0.00390625, %v4309_v16  ;;  %v5084_v60 = vmul.f32 0.00390625, %v4319_v63  ;;  %v5092_v16 = vmul.f32 0.00390625, %v4405_v39 }
 0x31d   :  { %v1693_v0 = vpop.xlane.xlu1 %1692  ;;  %v2499_v48 = vsel %vm1263_vm6, %v2427_v20, %v2498_v55 }
 0x31e   :  { %v2372_v62 = vrot.slane %v1693_v0, %v3495_v23 }
 0x320   :  { %v2373_v49 = vsel %vm686_vm1, %v2372_v62, %v2368_v54 }
 0x321   :  { %v1735_v5 = vpop.xlane.xlu1 %1734  ;;  %v2494_v3 = vsel %vm1267_vm8, %v2373_v49, %v2493_v40 }
 0x322   :  { %v2435_v30 = vrot.slane %v1735_v5, %v3495_v23  ;;  %v2528_v29 = vsel %vm162_vm0, %v2494_v3, -inf }
 0x323   :  { %2529 = vmax.xlane.f32.xlu0 %v2528_v29 }
 0x324   :  { %v2436_v47 = vsel %vm686_vm1, %v2435_v30, %v2431_v43 }
 0x325   :  { %v1741_v15 = vpop.xlane.xlu1 %1740  ;;  %v2500_v61 = vsel %vm1265_vm7, %v2436_v47, %v2499_v48 }
 0x326   :  { %v2444_v19 = vrot.slane %v1741_v15, %v3495_v23 }
 0x328   :  { %v2445_v8 = vsel %vm686_vm1, %v2444_v19, %v2440_v18 }
 0x329   :  { %v2501_v56 = vsel %vm1267_vm8, %v2445_v8, %v2500_v61  ;;  %v2515_v38 = vpop.xlane.xlu1 %2514 }
 0x32a   :  { %v2531_v1 = vsel %vm162_vm0, %v2501_v56, -inf  ;;  %v2616_v56 = vadd.s32 4294967280, %v3475_v11 }
 0x32b   :  { %2532 = vmax.xlane.f32.xlu1 %v2531_v1  ;;  %v2623_v1 = vadd.s32 4294967272, %v3475_v11 }
 0x334   :  { %v5071_v45 = vpop.xlane.xlu1 %2520 }
 0x339   :  { %2549 = vbcast.lane.b32.xlu0 %v2983_v7, 256 }
 0x33c   :  { %2553 = vbcast.lane.b32.xlu1 %v2983_v7, 264 }
 0x33d   :  { %2673 = vbcast.lane.b32.xlu0 %v2985_v52, 256 }
 0x340   :  { %2557 = vbcast.lane.b32.xlu1 %v2983_v7, 272 }
 0x341   :  { %2681 = vbcast.lane.b32.xlu0 %v2985_v52, 272 }
 0x344   :  { %2561 = vbcast.lane.b32.xlu1 %v2983_v7, 280 }
 0x348   :  { %2677 = vbcast.lane.b32.xlu1 %v2985_v52, 264 }
 0x34c   :  { %2685 = vbcast.lane.b32.xlu1 %v2985_v52, 280  ;;  %v5106_v52 = vsub.s32 %v2616_v56, %v3479_v14 }
 0x354   :  { %v5069_v33 = vpop.xlane.xlu0 %2523 }
 0x374   :  { %v2527_v59 = vpop.xlane.xlu1 %2526 }
 0x3ac   :  { %v5073_v54 = vpop.xlane.xlu0 %2529 }
 0x3b0   :  { %v2550_v53 = vpop.permute.xlu0 %2549 }
 0x3b1   :  { %v2567_v24 = vmul.f32 %v2550_v53, %v1350_v58  ;;  %v2571_v44 = vmul.f32 %v2550_v53, %v1354_v4  ;;  %v2785_v43 = vmul.f32 %v2550_v53, %v2512_v27  ;;  %v2789_v3 = vmul.f32 %v2550_v53, %v5069_v33 }
 0x3b3   :  { %2584 = vperm.xlu0 %2991, %v2567_v24  }
 0x3b4   :  { %v5076_v2 = vpop.xlane.xlu1 %2532  ;;  %v2674_v36 = vpop.permute.xlu0 %2673 }
 0x3b5   :  { %v2691_v63 = vmul.f32 %v2674_v36, %v1350_v58  ;;  %v2695_v29 = vmul.f32 %v2674_v36, %v1354_v4  ;;  %v2872_v34 = vmul.f32 %v2674_v36, %v2512_v27  ;;  %v2876_v18 = vmul.f32 %v2674_v36, %v5069_v33 }
 0x3b6   :  { %v5109_v27 = vsub.s32 %v2623_v1, %v3479_v14 }
 0x3b8   :  { %v2554_v0 = vpop.permute.xlu1 %2553  ;;  %v2682_v20 = vpop.permute.xlu0 %2681 }
 0x3b9   :  { %v2568_v57 = vmul.f32 %v2554_v0, %v1351_v32  ;;  %v2572_v51 = vmul.f32 %v2554_v0, %v1355_v37  ;;  %v2786_v5 = vmul.f32 %v2554_v0, %v2515_v38  ;;  %v2790_v35 = vmul.f32 %v2554_v0, %v2527_v59 }
 0x3ba   :  { %v2693_v6 = vmul.f32 %v2682_v20, %v1352_v10  ;;  %v2874_v47 = vmul.f32 %v2682_v20, %v5067_v25  ;;  %v2697_v36 = vmul.f32 %v2682_v20, %v5084_v60 }
 0x3bb   :  { %2587 = vperm.xlu1 %2992, %v2568_v57  }
 0x3bc   :  { %v2558_v21 = vpop.permute.xlu1 %2557 }
 0x3bd   :  { %v2569_v62 = vmul.f32 %v2558_v21, %v1352_v10  ;;  %v2573_v49 = vmul.f32 %v2558_v21, %v5084_v60  ;;  %v2787_v39 = vmul.f32 %v2558_v21, %v5067_v25  ;;  %v2791_v42 = vmul.f32 %v2558_v21, %v5073_v54 }
 0x3bf   :  { %2590 = vperm.xlu1 %2992, %v2569_v62  }
 0x3c0   :  { %v2562_v46 = vpop.permute.xlu1 %2561 }
 0x3c1   :  { %v2570_v13 = vmul.f32 %v2562_v46, %v1353_v28  ;;  %v2574_v9 = vmul.f32 %v2562_v46, %v5092_v16  ;;  %v2788_v41 = vmul.f32 %v2562_v46, %v5071_v45  ;;  %v2792_v17 = vmul.f32 %v2562_v46, %v5076_v2 }
 0x3c3   :  { %2596 = vperm.xlu1 %2992, %v2571_v44   ;;  %2593 = vperm.xlu0 %2991, %v2570_v13  }
 0x3c4   :  { %v2678_v31 = vpop.permute.xlu1 %2677 }
 0x3c5   :  { %v5087_v40 = vmul.f32 %v2678_v31, %v1355_v37  ;;  %v5089_v26 = vmul.f32 %v2678_v31, %v2527_v59  ;;  %v2692_v30 = vmul.f32 %v2678_v31, %v1351_v32  ;;  %v2873_v50 = vmul.f32 %v2678_v31, %v2515_v38 }
 0x3c7   :  { %2602 = vperm.xlu1 %2992, %v2573_v49   ;;  %2599 = vperm.xlu0 %2991, %v2572_v51  }
 0x3c8   :  { %v2686_v15 = vpop.permute.xlu1 %2685 }
 0x3c9   :  { %v2694_v55 = vmul.f32 %v2686_v15, %v1353_v28  ;;  %v2875_v19 = vmul.f32 %v2686_v15, %v5071_v45 }
 0x3cb   :  { %2605 = vperm.xlu0 %2991, %v2574_v9  }
 0x3cf   :  { %2708 = vperm.xlu0 %2991, %v2691_v63  }
 0x3d3   :  { %2802 = vperm.xlu0 %2991, %v2785_v43   ;;  %v2878_v43 = vmul.f32 %v2682_v20, %v5073_v54 }
 0x3d7   :  { %2805 = vperm.xlu0 %2991, %v2786_v5  }
 0x3db   :  { %2814 = vperm.xlu0 %2991, %v2789_v3  }
 0x3df   :  { %2817 = vperm.xlu0 %2991, %v2790_v35  }
 0x3e3   :  { %2808 = vperm.xlu0 %2991, %v2787_v39  }
 0x3e7   :  { %2820 = vperm.xlu0 %2991, %v2791_v42  }
 0x3eb   :  { %2711 = vperm.xlu0 %2991, %v2692_v30  }
 0x3ef   :  { %2720 = vperm.xlu0 %2991, %v2695_v29  }
 0x3f3   :  { %2811 = vperm.xlu0 %2991, %v2788_v41  }
 0x3f7   :  { %2823 = vperm.xlu0 %2991, %v2792_v17  }
 0x3fb   :  { %2889 = vperm.xlu0 %2991, %v2872_v34  }
 0x3ff   :  { %2892 = vperm.xlu0 %2991, %v2873_v50  }
 0x403   :  { %2901 = vperm.xlu0 %2991, %v2876_v18  }
 0x407   :  { %2714 = vperm.xlu0 %2991, %v2693_v6  }
 0x40b   :  { %2895 = vperm.xlu0 %2991, %v2874_v47  }
 0x40f   :  { %2717 = vperm.xlu0 %2991, %v2694_v55  }
 0x413   :  { %2898 = vperm.xlu0 %2991, %v2875_v19  }
 0x42e   :  { %v2585_v8 = vpop.permute.xlu0 %2584 }
 0x42f   :  { %v2610_v53 = vrot.slane %v2585_v8, %v3492_v22 }
 0x436   :  { %v2588_v48 = vpop.permute.xlu1 %2587 }
 0x437   :  { %v2614_v33 = vrot.slane %v2588_v48, %v3495_v23 }
 0x439   :  { %v2615_v0 = vsel %vm686_vm1, %v2614_v33, %v2610_v53 }
 0x43a   :  { %v2591_v61 = vpop.permute.xlu1 %2590 }
 0x43b   :  { %v2620_v59 = vrot.slane %v2591_v61, %v5106_v52 }
 0x43d   :  { %v2622_v10 = vsel %vm2621_vm9, %v2620_v59, %v2615_v0 }
 0x43e   :  { %v2597_v12 = vpop.permute.xlu1 %2596  ;;  %v2594_v7 = vpop.permute.xlu0 %2593 }
 0x43f   :  { %v2633_v45 = vrot.slane %v2597_v12, %v3492_v22  ;;  %v2627_v24 = vrot.slane %v2594_v7, %v5109_v27 }
 0x441   :  { %v2629_v62 = vsel %vm2628_vm10, %v2627_v24, %v2622_v10 }
 0x442   :  { %v2603_v25 = vpop.permute.xlu1 %2602  ;;  %v2600_v38 = vpop.permute.xlu0 %2599 }
 0x443   :  { %v2637_v58 = vrot.slane %v2600_v38, %v3495_v23  ;;  %v2642_v11 = vrot.slane %v2603_v25, %v5106_v52 }
 0x445   :  { %v2638_v14 = vsel %vm686_vm1, %v2637_v58, %v2633_v45 }
 0x446   :  { %v2606_v32 = vpop.permute.xlu0 %2605  ;;  %v2643_v21 = vsel %vm2621_vm9, %v2642_v11, %v2638_v14 }
 0x447   :  { %v2647_v57 = vrot.slane %v2606_v32, %v5109_v27 }
 0x449   :  { %v2648_v28 = vsel %vm2628_vm10, %v2647_v57, %v2643_v21 }
 0x44a   :  { %v2709_v4 = vpop.permute.xlu0 %2708  ;;  %v2649_v46 = vsel %vm1255_vm2, %v2648_v28, %v2629_v62 }
 0x44b   :  { %v2652_v44 = vsel %vm2651_vm11, %v2649_v46, 0.0  ;;  %v2734_v5 = vrot.slane %v2709_v4, %v3492_v22 }
 0x44c   :  { %2653 = vadd.xlane.f32.xlu1 %v2652_v44 }
 0x44e   :  { %v2803_v13 = vpop.permute.xlu0 %2802 }
 0x44f   :  { %v2828_v41 = vrot.slane %v2803_v13, %v3492_v22 }
 0x452   :  { %v2806_v37 = vpop.permute.xlu0 %2805 }
 0x453   :  { %v2832_v60 = vrot.slane %v2806_v37, %v3495_v23 }
 0x455   :  { %v2833_v50 = vsel %vm686_vm1, %v2832_v60, %v2828_v41  ;;  %v2775_v60 = vstv %s2986_s18 }
 0x456   :  { %v2815_v31 = vpop.permute.xlu0 %2814 }
 0x457   :  { %v2847_v17 = vrot.slane %v2815_v31, %v3492_v22 }
 0x45a   :  { %v2818_v51 = vpop.permute.xlu0 %2817 }
 0x45b   :  { %v2851_v30 = vrot.slane %v2818_v51, %v3495_v23 }
 0x45d   :  { %2723 = vperm.xlu1 %2992, %v5087_v40   ;;  %v2698_v40 = vmul.f32 %v2686_v15, %v5092_v16 }
 0x45e   :  { %v2809_v49 = vpop.permute.xlu0 %2808 }
 0x45f   :  { %v2837_v54 = vrot.slane %v2809_v49, %v5106_v52 }
 0x461   :  { %2904 = vperm.xlu1 %2992, %v5089_v26   ;;  %v2879_v26 = vmul.f32 %v2686_v15, %v5076_v2  ;;  %v2852_v2 = vsel %vm686_vm1, %v2851_v30, %v2847_v17  ;;  %v2838_v20 = vsel %vm2621_vm9, %v2837_v54, %v2833_v50  ;;  %v2984_v17 = vld [vmem:[%s5197_s3] ss:$0 sm:$0xff] }
 0x462   :  { %v2821_v9 = vpop.permute.xlu0 %2820 }
 0x463   :  { %v2856_v29 = vrot.slane %v2821_v9, %v5106_v52 }
 0x465   :  { %2726 = vperm.xlu1 %2992, %v2697_v36   ;;  %v2857_v6 = vsel %vm2621_vm9, %v2856_v29, %v2852_v2 }
 0x466   :  { %v2712_v63 = vpop.permute.xlu0 %2711 }
 0x467   :  { %v2738_v3 = vrot.slane %v2712_v63, %v3495_v23 }
 0x469   :  { %v2739_v35 = vsel %vm686_vm1, %v2738_v3, %v2734_v5  ;;  %2907 = vperm.xlu1 %2992, %v2878_v43  }
 0x46a   :  { %v2721_v39 = vpop.permute.xlu0 %2720 }
 0x46b   :  { %v2753_v53 = vrot.slane %v2721_v39, %v3492_v22 }
 0x46d   :  { %2729 = vperm.xlu1 %2992, %v2698_v40   ;;  %v2656_v40 = vstv %s2655_s1 }
 0x46e   :  { %v2812_v42 = vpop.permute.xlu0 %2811 }
 0x46f   :  { %v2842_v34 = vrot.slane %v2812_v42, %v5109_v27 }
 0x471   :  { %2910 = vperm.xlu1 %2992, %v2879_v26   ;;  %v2843_v47 = vsel %vm2628_vm10, %v2842_v34, %v2838_v20 }
 0x472   :  { %v2824_v16 = vpop.permute.xlu0 %2823 }
 0x473   :  { %v2861_v18 = vrot.slane %v2824_v16, %v5109_v27  ;;  %v2987_v16 = vld [vmem:[%s5197_s3 + $0x1] ss:$0 sm:$0xff]  ;;  %s3163_s3 = smov [#allocation5]  }
 0x474   :  { %s2973_s25 = sshll.u32 %s3163_s3, 4  ;;  %s2974_s25 = int_to_ptr.vmem [resolvable:$true] %s2973_s25 }
 0x475   :  { %v2862_v15 = vsel %vm2628_vm10, %v2861_v18, %v2857_v6  ;;  %v2982_v6 = vld [vmem:[%s5198_s4] ss:$0 sm:$0xff]  ;;  %s3137_s4 = scalar_lea.vmem %s2974_s25, 32  ;;  %p3142_p6 = scmp.lt.s32.totalorder %s2974_s25, %s2974_s25 }
 0x476   :  { %v2863_v55 = vsel %vm1255_vm2, %v2862_v15, %v2843_v47  ;;  %v2890_v48 = vpop.permute.xlu0 %2889  ;;  %p3138_p5 = scmp.ne.s32.totalorder %s2974_s25, %s3137_s4  ;;  %p3143_p7 = scmp.lt.s32.totalorder %s3137_s4, %s3137_s4 }
 0x477   :  { %v2865_v19 = vsel %vm2651_vm11, %v2863_v55, 0.0  ;;  %v2915_v14 = vrot.slane %v2890_v48, %v3492_v22 }
 0x478   :  { %2866 = vadd.xlane.f32.xlu0 %v2865_v19  ;;  %p3144_p8 = por %p3143_p7, %p3142_p6 }
 0x47a   :  { %v2893_v8 = vpop.permute.xlu0 %2892  ;;  %p3145_p9 = pnand %p3144_p8, %p3138_p5 }
 0x47b   :  { %v2919_v57 = vrot.slane %v2893_v8, %v3495_v23 }
 0x47d   :  { %v2920_v9 = vsel %vm686_vm1, %v2919_v57, %v2915_v14 }
 0x47e   :  { %v2902_v61 = vpop.permute.xlu0 %2901 }
 0x47f   :  { %v2934_v13 = vrot.slane %v2902_v61, %v3492_v22 }
 0x482   :  { %v2715_v1 = vpop.permute.xlu0 %2714 }
 0x483   :  { %v2743_v59 = vrot.slane %v2715_v1, %v5106_v52 }
 0x485   :  { %v2744_v28 = vsel %vm2621_vm9, %v2743_v59, %v2739_v35 }
 0x486   :  { %v2896_v7 = vpop.permute.xlu0 %2895 }
 0x487   :  { %v2924_v4 = vrot.slane %v2896_v7, %v5106_v52 }
 0x48a   :  { %v2718_v33 = vpop.permute.xlu0 %2717 }
 0x48b   :  { %v2748_v24 = vrot.slane %v2718_v33, %v5109_v27 }
 0x48d   :  { %v2749_v31 = vsel %vm2628_vm10, %v2748_v24, %v2744_v28 }
 0x48e   :  { %v2899_v32 = vpop.permute.xlu0 %2898 }
 0x48f   :  { %v2929_v37 = vrot.slane %v2899_v32, %v5109_v27 }
 0x4d5   :  { %v2654_v56 = vpop.xlane.xlu1 %2653 }
 0x4d6   :  { %v2657_v42 = vadd.f32 %v2656_v40, %v2654_v56 }
 0x4d8   :  { %v2658_v54 = vmax.f32 %v2657_v42, 0.0 }
 0x4d9   :  { %v2724_v12 = vpop.permute.xlu1 %2723 }
 0x4da   :  { %v2757_v58 = vrot.slane %v2724_v12, %v3495_v23  ;;  %v2664_v2 = vmul.f32 %v2984_v17, %v2658_v54 }
 0x4dc   :  { %v2758_v10 = vsel %vm686_vm1, %v2757_v58, %v2753_v53  ;;  %v2665_v55 = vadd.f32 %v2982_v6, %v2664_v2 }
 0x4dd   :  { %v2905_v25 = vpop.permute.xlu1 %2904 }
 0x4de   :  { %v2938_v21 = vrot.slane %v2905_v25, %v3495_v23 }
 0x4e0   :  { %v2939_v36 = vsel %vm686_vm1, %v2938_v21, %v2934_v13 }
 0x4e1   :  { %v2727_v38 = vpop.permute.xlu1 %2726 }
 0x4e2   :  { %v2762_v11 = vrot.slane %v2727_v38, %v5106_v52 }
 0x4e4   :  { %v2763_v46 = vsel %vm2621_vm9, %v2762_v11, %v2758_v10 }
 0x4e5   :  { %v2908_v45 = vpop.permute.xlu1 %2907 }
 0x4e6   :  { %v2943_v44 = vrot.slane %v2908_v45, %v5106_v52  ;;  %v2925_v52 = vsel %vm2621_vm9, %v2924_v4, %v2920_v9 }
 0x4e7   :  { %v2930_v5 = vsel %vm2628_vm10, %v2929_v37, %v2925_v52 }
 0x4e8   :  { %v2944_v22 = vsel %vm2621_vm9, %v2943_v44, %v2939_v36 }
 0x4e9   :  { %v2730_v0 = vpop.permute.xlu1 %2729 }
 0x4ea   :  { %v2767_v62 = vrot.slane %v2730_v0, %v5109_v27 }
 0x4ec   :  { %v2768_v51 = vsel %vm2628_vm10, %v2767_v62, %v2763_v46 }
 0x4ed   :  { %v2911_v49 = vpop.permute.xlu1 %2910  ;;  %v2769_v23 = vsel %vm1255_vm2, %v2768_v51, %v2749_v31 }
 0x4ee   :  { %v2948_v63 = vrot.slane %v2911_v49, %v5109_v27  ;;  %v2771_v43 = vsel %vm2651_vm11, %v2769_v23, 0.0 }
 0x4ef   :  { %2772 = vadd.xlane.f32.xlu1 %v2771_v43 }
 0x4f0   :  { %v2949_v3 = vsel %vm2628_vm10, %v2948_v63, %v2944_v22 }
 0x4f1   :  { %v2950_v35 = vsel %vm1255_vm2, %v2949_v3, %v2930_v5 }
 0x4f2   :  { %v2952_v39 = vsel %vm2651_vm11, %v2950_v35, 0.0 }
 0x4f3   :  { %2953 = vadd.xlane.f32.xlu0 %v2952_v39 }
 0x501   :  { %v2867_v27 = vpop.xlane.xlu0 %2866 }
 0x502   :  { %v2868_v26 = vadd.f32 %v2867_v27, %v2656_v40 }
 0x504   :  { %v2869_v29 = vmax.f32 %v2868_v26, 0.0 }
 0x506   :  { %v2870_v18 = vmul.f32 %v2984_v17, %v2869_v29 }
 0x508   :  { %v2871_v19 = vadd.f32 %v2982_v6, %v2870_v18 }
 0x578   :  { %v2773_v30 = vpop.xlane.xlu1 %2772 }
 0x579   :  { %v2776_v41 = vadd.f32 %v2775_v60, %v2773_v30 }
 0x57b   :  { %v2777_v34 = vmax.f32 %v2776_v41, 0.0 }
 0x57c   :  { %v2954_v50 = vpop.xlane.xlu0 %2953 }
 0x57d   :  { %v2955_v20 = vadd.f32 %v2954_v50, %v2775_v60  ;;  %v2783_v47 = vmul.f32 %v2987_v16, %v2777_v34 }
 0x57f   :  { %v2956_v15 = vmax.f32 %v2955_v20, 0.0  ;;  %v2784_v8 = vadd.f32 %v2783_v47, %v2665_v55 }
 0x581   :  { %v2957_v48 = vmul.f32 %v2987_v16, %v2956_v15 }
 0x583   :  { %v2958_v61 = vadd.f32 %v2957_v48, %v2871_v19 }
 0x585   :  { %v2959_v56 = vadd.f32 %v2958_v61, %v2784_v8 }
 0x587   :  { %v2960_v1 = vsub.f32 0.0, %v2959_v56 }
 0x589   :  { %v2961_v12 = vmul.f32 1.442695, %v2960_v1 }
 0x58b   :  { %2993 = vpow2.f32 %v2961_v12 }
 0x598   :  { %v2994_v7 = vpop.eup %2993 }
 0x599   :  { %v2963_v25 = vadd.f32 1.0, %v2994_v7 }
 0x59b   :  { %2995 = vrcp.f32 %v2963_v25 }
 0x5a8   :  { %v2996_v38 = vpop.eup %2995 }
 0x5a9   :  { %2966 = vst.msk [vmem:[#allocation5] sm:$0x3] %vm2651_vm11, %v2996_v38 }
 0x5aa   :  { %3148 = shalt.err (!%p3145_p9)
}
 0x5ab   :  { %2976 = dma.vmem_to_hbm [thread:$0]  %s2974_s25, 32, %s5199_s5, [#allocation3]  }
 0x5ac   :  { %3159 = dma.done.wait [#allocation3], 32  }
 0x5ad   :  { %3160 = vsyncadd [#allocation3], 4294967264 }
 0x5ae   :  { %2980 = vsyncpa [#allocation3], 1 }
 0x5af   :  { %2981 = vsyncpa [#allocation4], 1 }

</bundles_post_ra>
